<compile_context>
chip_gen: v7x
topology: tpu7x:2x2x1
jax: 0.10.0
libtpu: 0.0.40
codegen_flags: <defaults>
</compile_context>

<pallas_src>
import jax
import jax.numpy as jnp
from jax.experimental import pallas as pl
from jax.experimental.pallas import tpu as pltpu


def _predictor_kernel(x_ref, wih_ref, whh_ref, b_ref,
                      out_ref, hn_ref, cn_ref,
                      xp_scr):
    T, Bt, E = x_ref.shape
    H = whh_ref.shape[0]
    G4 = 4 * H
    horizon = out_ref.shape[1]

    # Weights / bias resident in VMEM, read once (weights are bf16 = native MXU dtype).
    wih = wih_ref[...]          # (E, 4H)  bf16
    whh = whh_ref[...]          # (H, 4H)  bf16
    bias = b_ref[...]           # (1, 4H)  f32  == b_ih + b_hh

    # Hoisted (loop-invariant) lane masks for the fused full-width activation:
    # sigmoid on the i/f/o lanes, tanh (= 2*sigmoid(2x) - 1) on the g lanes,
    # so ONE full-vreg EUP sigmoid covers all 4H lanes per step.
    lane = jax.lax.broadcasted_iota(jnp.int32, (Bt, G4), 1)
    is_g = jnp.logical_and(lane >= 2 * H, lane < 3 * H)
    m2 = jnp.where(is_g, 2.0, 1.0).astype(jnp.float32)
    off = m2 - 1.0

    # Pass-0 input projection: ONE bulk MXU matmul (bf16 in, f32 acc) covers
    # every timestep; written straight into the VMEM scratch (bounds live ranges).
    x_bt = x_ref[...].reshape(T * Bt, E).astype(jnp.bfloat16)
    xp0 = jnp.dot(x_bt, wih, preferred_element_type=jnp.float32) + bias
    xp_scr[0] = xp0.reshape(T, Bt, G4)

    def run_pass(slot, next_slot, write_next, h0, c0):
        def step(t, carry):
            h, c = carry
            # Only the (Bt,H)@(H,4H) recurrent matmul sits on the serial chain.
            gates = xp_scr[slot, t] + jnp.dot(
                h.astype(jnp.bfloat16), whh, preferred_element_type=jnp.float32)
            # Fused activation over the whole (Bt, 4H) vreg (single EUP sigmoid).
            act = m2 * jax.nn.sigmoid(m2 * gates) - off
            # NOTE: with H=32 these are 32-lane selects of a register value;
            # pad H to 128 in production for fully lane-aligned i/f/g/o blocks.
            i_g = act[:, 0 * H:1 * H]
            f_g = act[:, 1 * H:2 * H]
            g_g = act[:, 2 * H:3 * H]
            o_g = act[:, 3 * H:4 * H]
            c_new = f_g * c + i_g * g_g
            h_new = o_g * jnp.tanh(c_new)
            if write_next:
                # Fuse the NEXT pass's input projection into this step: the
                # tiny push uses the otherwise-idle MXU, removing both the
                # h-sequence scratch and the bulk inter-pass matmul.
                xp_scr[next_slot, t] = (
                    jnp.dot(h_new.astype(jnp.bfloat16), wih,
                            preferred_element_type=jnp.float32) + bias)
            return h_new, c_new

        return jax.lax.fori_loop(0, T, step, (h0, c0), unroll=min(T, 8))

    h = jnp.zeros((Bt, H), jnp.float32)
    c = jnp.zeros((Bt, H), jnp.float32)
    for i in range(horizon):                    # static HORIZON (default 2)
        h, c = run_pass(i % 2, (i + 1) % 2, i < horizon - 1, h, c)
        out_ref[:, i, :] = h.astype(out_ref.dtype)

    hn_ref[...] = h.astype(hn_ref.dtype)
    cn_ref[...] = c.astype(cn_ref.dtype)


def predictor_forward(x, params, horizon=2, batch_tile=8):
    """x: (B, T, input_size) f32. Returns (output, (h_n, c_n)) like Predictor.forward."""
    B, T, E = x.shape
    H = params["w_hh_t"].shape[0]
    if horizon > 1 and E != H:
        raise ValueError("Predictor feeds the LSTM output back as its input for "
                         "HORIZON > 1, which requires input_size == output_size.")

    # Pad batch to a sublane-aligned tile and shard tiles across the grid
    # ("parallel" -> both TensorCores on v7x, no-op on v5e/v6e).
    Bt = batch_tile
    Bpad = ((B + Bt - 1) // Bt) * Bt
    if Bpad != B:
        x = jnp.concatenate([x, jnp.zeros((Bpad - B, T, E), x.dtype)], axis=0)
    x_tm = jnp.transpose(x, (1, 0, 2))          # time-major (T, Bpad, E)

    # bf16 MXU operands (native MXU dtype on v5e/v6e/v7x), f32 accumulation in-kernel.
    wih = params["w_ih_t"].astype(jnp.bfloat16)   # (E, 4H)
    whh = params["w_hh_t"].astype(jnp.bfloat16)   # (H, 4H)
    bias = params["b"].astype(jnp.float32)        # (1, 4H)

    n_tiles = Bpad // Bt

    # Rough per-tile VMEM budget (double-buffered BlockSpec arrays + scratch);
    # set the scoped limit explicitly with headroom (defaults are 16/32 MiB).
    est = (2 * (T * Bt * E * 4                 # x tile (f32)
                + E * 4 * H * 2 + H * 4 * H * 2 + 4 * H * 4   # weights / bias
                + Bt * horizon * H * 4 + 2 * Bt * H * 4)      # outputs
           + 2 * T * Bt * 4 * H * 4)           # xproj scratch (2 slots, f32)
    vmem_limit = int(min(max(2 * est + (8 << 20), 32 << 20), 64 << 20))

    out, h_n, c_n = pl.pallas_call(
        _predictor_kernel,
        out_shape=(
            jax.ShapeDtypeStruct((Bpad, horizon, H), x.dtype),   # output
            jax.ShapeDtypeStruct((Bpad, H), x.dtype),            # h_n
            jax.ShapeDtypeStruct((Bpad, H), x.dtype),            # c_n
        ),
        grid=(n_tiles,),
        in_specs=[
            pl.BlockSpec((T, Bt, E), lambda b: (0, b, 0)),       # x (time-major tile)
            pl.BlockSpec((E, 4 * H), lambda b: (0, 0)),          # W_ih^T (bf16)
            pl.BlockSpec((H, 4 * H), lambda b: (0, 0)),          # W_hh^T (bf16)
            pl.BlockSpec((1, 4 * H), lambda b: (0, 0)),          # b_ih + b_hh
        ],
        out_specs=(
            pl.BlockSpec((Bt, horizon, H), lambda b: (b, 0, 0)),
            pl.BlockSpec((Bt, H), lambda b: (b, 0)),
            pl.BlockSpec((Bt, H), lambda b: (b, 0)),
        ),
        scratch_shapes=[
            pltpu.VMEM((2, T, Bt, 4 * H), jnp.float32),   # ping-pong input projections
        ],
        compiler_params=pltpu.CompilerParams(
            dimension_semantics=("parallel",),
            vmem_limit_bytes=vmem_limit),
    )(x_tm, wih, whh, bias)

    out, h_n, c_n = out[:B], h_n[:B], c_n[:B]
    # PyTorch returns h, c with a leading num_layers=1 axis.
    return out, (h_n[None], c_n[None])


def init_params(key, input_size, hidden_size):
    """Deterministic synthetic parameters matching nn.LSTM(input_size, hidden_size)."""
    E, H = input_size, hidden_size
    k = 1.0 / jnp.sqrt(jnp.float32(H))
    keys = jax.random.split(key, 4)
    w_ih = jax.random.uniform(keys[0], (4 * H, E), jnp.float32, -k, k)   # weight_ih_l0
    w_hh = jax.random.uniform(keys[1], (4 * H, H), jnp.float32, -k, k)   # weight_hh_l0
    b_ih = jax.random.uniform(keys[2], (4 * H,), jnp.float32, -k, k)
    b_hh = jax.random.uniform(keys[3], (4 * H,), jnp.float32, -k, k)
    return {
        "w_ih_t": w_ih.T,                       # (E, 4H)
        "w_hh_t": w_hh.T,                       # (H, 4H)
        "b": (b_ih + b_hh).reshape(1, 4 * H),   # (1, 4H)
    }


def predictor_reference(x, params, horizon=2):
    """Pure-JAX reference (lax.scan LSTM, rolled out HORIZON times)."""
    B, T, E = x.shape
    H = params["w_hh_t"].shape[0]

    def lstm_apply(seq, h0, c0):
        def step(carry, x_t):
            h, c = carry
            gates = x_t @ params["w_ih_t"] + h @ params["w_hh_t"] + params["b"]
            i = jax.nn.sigmoid(gates[:, 0 * H:1 * H])
            f = jax.nn.sigmoid(gates[:, 1 * H:2 * H])
            g = jnp.tanh(gates[:, 2 * H:3 * H])
            o = jax.nn.sigmoid(gates[:, 3 * H:4 * H])
            c_new = f * c + i * g
            h_new = o * jnp.tanh(c_new)
            return (h_new, c_new), h_new
        (h_n, c_n), hs = jax.lax.scan(step, (h0, c0), jnp.transpose(seq, (1, 0, 2)))
        return jnp.transpose(hs, (1, 0, 2)), h_n, c_n

    h = jnp.zeros((B, H), jnp.float32)
    c = jnp.zeros((B, H), jnp.float32)
    seq = x
    outs = []
    for _ in range(horizon):
        seq, h, c = lstm_apply(seq, h, c)
        outs.append(h[:, None, :])              # h.swapaxes(0, 1)
    output = jnp.concatenate(outs, axis=1)      # (B, HORIZON, H)
    return output, (h[None], c[None])


if __name__ == "__main__":
    # Small shapes consistent with the module: Predictor requires
    # input_size == output_size for HORIZON > 1 (it feeds its output back).
    B, T = 2, 8
    E = H = 32
    HORIZON = 2

    key = jax.random.PRNGKey(0)
    k_x, k_p = jax.random.split(key)
    x = jax.random.normal(k_x, (B, T, E), jnp.float32)
    params = init_params(k_p, E, H)

    out, (h_n, c_n) = predictor_forward(x, params, horizon=HORIZON)
    jax.block_until_ready((out, h_n, c_n))

    # Reference uses the bf16-rounded weights upcast to f32 so the only
    # remaining difference is the bf16 activation casts at the MXU.
    ref_params = {
        "w_ih_t": params["w_ih_t"].astype(jnp.bfloat16).astype(jnp.float32),
        "w_hh_t": params["w_hh_t"].astype(jnp.bfloat16).astype(jnp.float32),
        "b": params["b"],
    }
    out_r, (hn_r, cn_r) = predictor_reference(x, ref_params, horizon=HORIZON)

    assert out.shape == (B, HORIZON, H)
    assert h_n.shape == (1, B, H) and c_n.shape == (1, B, H)
    assert jnp.allclose(out, out_r, atol=3e-2), float(jnp.max(jnp.abs(out - out_r)))
    assert jnp.allclose(h_n, hn_r, atol=3e-2), float(jnp.max(jnp.abs(h_n - hn_r)))
    assert jnp.allclose(c_n, cn_r, atol=5e-2), float(jnp.max(jnp.abs(c_n - cn_r)))

    print("KERNEL_OK")
</pallas_src>

<mosaic_0001>
module attributes {stable_mosaic.version = 11 : i64} {
  func.func @_predictor_kernel(%arg0: i32, %arg1: memref<8x8x32xf32, #tpu.memory_space<vmem>>, %arg2: memref<32x128xbf16, #tpu.memory_space<vmem>>, %arg3: memref<32x128xbf16, #tpu.memory_space<vmem>>, %arg4: memref<1x128xf32, #tpu.memory_space<vmem>>, %arg5: memref<8x2x32xf32, #tpu.memory_space<vmem>>, %arg6: memref<8x32xf32, #tpu.memory_space<vmem>>, %arg7: memref<8x32xf32, #tpu.memory_space<vmem>>, %arg8: memref<2x8x8x128xf32, #tpu.memory_space<vmem>>) attributes {dimension_semantics = [#tpu.dimension_semantics<parallel>], iteration_bounds = array<i64: 1>, scalar_prefetch = 0 : i64, scratch_operands = 1 : i64, tpu.core_type = #tpu.core_type<tc>, window_params = [{transform_indices = @transform_0, window_bounds = array<i64: 8, 8, 32>}, {pipeline_mode = #tpu.pipeline_mode<synchronous>, transform_indices = @transform_1, window_bounds = array<i64: 32, 128>}, {pipeline_mode = #tpu.pipeline_mode<synchronous>, transform_indices = @transform_2, window_bounds = array<i64: 32, 128>}, {pipeline_mode = #tpu.pipeline_mode<synchronous>, transform_indices = @transform_3, window_bounds = array<i64: 1, 128>}, {transform_indices = @transform_4, window_bounds = array<i64: 8, 2, 32>}, {transform_indices = @transform_5, window_bounds = array<i64: 8, 32>}, {transform_indices = @transform_6, window_bounds = array<i64: 8, 32>}]} {
    %c0 = arith.constant 0 : index
    %c0_0 = arith.constant 0 : index
    %0 = vector.load %arg2[%c0, %c0_0] : memref<32x128xbf16, #tpu.memory_space<vmem>>, vector<32x128xbf16>
    %c0_1 = arith.constant 0 : index
    %c0_2 = arith.constant 0 : index
    %1 = vector.load %arg3[%c0_1, %c0_2] : memref<32x128xbf16, #tpu.memory_space<vmem>>, vector<32x128xbf16>
    %c0_3 = arith.constant 0 : index
    %c0_4 = arith.constant 0 : index
    %2 = vector.load %arg4[%c0_3, %c0_4] : memref<1x128xf32, #tpu.memory_space<vmem>>, vector<1x128xf32>
    %3 = tpu.iota {dimensions = array<i32: 1>} : vector<8x128xi32>
    %c64_i32 = arith.constant 64 : i32
    %4 = vector.broadcast %c64_i32 : i32 to vector<8x128xi32>
    %5 = arith.cmpi sge, %3, %4 : vector<8x128xi32>
    %c96_i32 = arith.constant 96 : i32
    %6 = vector.broadcast %c96_i32 : i32 to vector<8x128xi32>
    %7 = arith.cmpi slt, %3, %6 : vector<8x128xi32>
    %8 = arith.andi %5, %7 : vector<8x128xi1>
    %cst = arith.constant 2.000000e+00 : f32
    %cst_5 = arith.constant 1.000000e+00 : f32
    %9 = vector.broadcast %cst : f32 to vector<8x128xf32>
    %10 = vector.broadcast %cst_5 : f32 to vector<8x128xf32>
    %11 = arith.select %8, %9, %10 : vector<8x128xi1>, vector<8x128xf32>
    %cst_6 = arith.constant 1.000000e+00 : f32
    %12 = vector.broadcast %cst_6 : f32 to vector<8x128xf32>
    %13 = arith.subf %11, %12 : vector<8x128xf32>
    %c0_7 = arith.constant 0 : index
    %c0_8 = arith.constant 0 : index
    %c0_9 = arith.constant 0 : index
    %14 = vector.load %arg1[%c0_7, %c0_8, %c0_9] : memref<8x8x32xf32, #tpu.memory_space<vmem>>, vector<8x8x32xf32>
    %15 = vector.shape_cast %14 : vector<8x8x32xf32> to vector<64x32xf32>
    %16 = arith.truncf %15 : vector<64x32xf32> to vector<64x32xbf16>
    %cst_10 = arith.constant dense<0.000000e+00> : vector<64x128xf32>
    %17 = tpu.matmul %16, %0, %cst_10 {dimension_numbers = #tpu.dot_dimension_numbers<[1], [0], [0], [1], [0, 0, 1, 1], [], []>} : vector<64x32xbf16>, vector<32x128xbf16>, vector<64x128xf32> -> vector<64x128xf32>
    %18 = vector.broadcast %2 : vector<1x128xf32> to vector<64x128xf32>
    %19 = arith.addf %17, %18 : vector<64x128xf32>
    %20 = vector.shape_cast %19 : vector<64x128xf32> to vector<8x8x128xf32>
    %c0_11 = arith.constant 0 : index
    %c0_12 = arith.constant 0 : index
    %c0_13 = arith.constant 0 : index
    %c0_14 = arith.constant 0 : index
    %21 = vector.load %arg8[%c0_11, %c0_12, %c0_13, %c0_14] : memref<2x8x8x128xf32, #tpu.memory_space<vmem>>, vector<1x8x8x128xf32>
    %22 = vector.shape_cast %21 : vector<1x8x8x128xf32> to vector<8x8x128xf32>
    %23 = vector.shape_cast %20 : vector<8x8x128xf32> to vector<1x8x8x128xf32>
    tpu.vector_store %arg8[%c0_11, %c0_12, %c0_13, %c0_14], %23 {strides = array<i32>} : memref<2x8x8x128xf32, #tpu.memory_space<vmem>>, vector<1x8x8x128xf32>,
    %cst_15 = arith.constant 0.000000e+00 : f32
    %24 = vector.broadcast %cst_15 : f32 to vector<8x32xf32>
    %cst_16 = arith.constant 0.000000e+00 : f32
    %25 = vector.broadcast %cst_16 : f32 to vector<8x32xf32>
    %c0_i32 = arith.constant 0 : i32
    %c0_17 = arith.constant 0 : index
    %26 = arith.index_cast %c0_i32 : i32 to index
    %c0_18 = arith.constant 0 : index
    %c0_19 = arith.constant 0 : index
    %27 = vector.load %arg8[%c0_17, %26, %c0_18, %c0_19] : memref<2x8x8x128xf32, #tpu.memory_space<vmem>>, vector<1x1x8x128xf32>
    %28 = vector.shape_cast %27 : vector<1x1x8x128xf32> to vector<8x128xf32>
    %29 = arith.truncf %24 : vector<8x32xf32> to vector<8x32xbf16>
    %cst_20 = arith.constant dense<0.000000e+00> : vector<8x128xf32>
    %30 = tpu.matmul %29, %1, %cst_20 {dimension_numbers = #tpu.dot_dimension_numbers<[1], [0], [0], [1], [0, 0, 1, 1], [], []>} : vector<8x32xbf16>, vector<32x128xbf16>, vector<8x128xf32> -> vector<8x128xf32>
    %31 = arith.addf %28, %30 : vector<8x128xf32>
    %32 = arith.mulf %11, %31 : vector<8x128xf32>
    %33 = arith.negf %32 : vector<8x128xf32>
    %34 = math.exp %33 : vector<8x128xf32>
    %cst_21 = arith.constant 1.000000e+00 : f32
    %35 = vector.broadcast %cst_21 : f32 to vector<8x128xf32>
    %36 = arith.addf %35, %34 : vector<8x128xf32>
    %37 = arith.divf %35, %36 : vector<8x128xf32>
    %38 = arith.mulf %11, %37 : vector<8x128xf32>
    %39 = arith.subf %38, %13 : vector<8x128xf32>
    %40 = vector.extract_strided_slice %39 {offsets = [0, 0], sizes = [8, 32], strides = [1, 1]} : vector<8x128xf32> to vector<8x32xf32>
    %41 = vector.extract_strided_slice %39 {offsets = [0, 32], sizes = [8, 32], strides = [1, 1]} : vector<8x128xf32> to vector<8x32xf32>
    %42 = vector.extract_strided_slice %39 {offsets = [0, 64], sizes = [8, 32], strides = [1, 1]} : vector<8x128xf32> to vector<8x32xf32>
    %43 = vector.extract_strided_slice %39 {offsets = [0, 96], sizes = [8, 32], strides = [1, 1]} : vector<8x128xf32> to vector<8x32xf32>
    %44 = arith.mulf %41, %25 : vector<8x32xf32>
    %45 = arith.mulf %40, %42 : vector<8x32xf32>
    %46 = arith.addf %44, %45 : vector<8x32xf32>
    %47 = math.tanh %46 : vector<8x32xf32>
    %48 = arith.mulf %43, %47 : vector<8x32xf32>
    %49 = arith.truncf %48 : vector<8x32xf32> to vector<8x32xbf16>
    %cst_22 = arith.constant dense<0.000000e+00> : vector<8x128xf32>
    %50 = tpu.matmul %49, %0, %cst_22 {dimension_numbers = #tpu.dot_dimension_numbers<[1], [0], [0], [1], [0, 0, 1, 1], [], []>} : vector<8x32xbf16>, vector<32x128xbf16>, vector<8x128xf32> -> vector<8x128xf32>
    %51 = vector.broadcast %2 : vector<1x128xf32> to vector<8x128xf32>
    %52 = arith.addf %50, %51 : vector<8x128xf32>
    %c1 = arith.constant 1 : index
    %53 = arith.index_cast %c0_i32 : i32 to index
    %c0_23 = arith.constant 0 : index
    %c0_24 = arith.constant 0 : index
    %54 = vector.load %arg8[%c1, %53, %c0_23, %c0_24] : memref<2x8x8x128xf32, #tpu.memory_space<vmem>>, vector<1x1x8x128xf32>
    %55 = vector.shape_cast %54 : vector<1x1x8x128xf32> to vector<8x128xf32>
    %56 = vector.shape_cast %52 : vector<8x128xf32> to vector<1x1x8x128xf32>
    tpu.vector_store %arg8[%c1, %53, %c0_23, %c0_24], %56 {strides = array<i32>} : memref<2x8x8x128xf32, #tpu.memory_space<vmem>>, vector<1x1x8x128xf32>,
    %c1_i32 = arith.constant 1 : i32
    %c0_25 = arith.constant 0 : index
    %57 = arith.index_cast %c1_i32 : i32 to index
    %c0_26 = arith.constant 0 : index
    %c0_27 = arith.constant 0 : index
    %58 = vector.load %arg8[%c0_25, %57, %c0_26, %c0_27] : memref<2x8x8x128xf32, #tpu.memory_space<vmem>>, vector<1x1x8x128xf32>
    %59 = vector.shape_cast %58 : vector<1x1x8x128xf32> to vector<8x128xf32>
    %60 = arith.truncf %48 : vector<8x32xf32> to vector<8x32xbf16>
    %cst_28 = arith.constant dense<0.000000e+00> : vector<8x128xf32>
    %61 = tpu.matmul %60, %1, %cst_28 {dimension_numbers = #tpu.dot_dimension_numbers<[1], [0], [0], [1], [0, 0, 1, 1], [], []>} : vector<8x32xbf16>, vector<32x128xbf16>, vector<8x128xf32> -> vector<8x128xf32>
    %62 = arith.addf %59, %61 : vector<8x128xf32>
    %63 = arith.mulf %11, %62 : vector<8x128xf32>
    %64 = arith.negf %63 : vector<8x128xf32>
    %65 = math.exp %64 : vector<8x128xf32>
    %cst_29 = arith.constant 1.000000e+00 : f32
    %66 = vector.broadcast %cst_29 : f32 to vector<8x128xf32>
    %67 = arith.addf %66, %65 : vector<8x128xf32>
    %68 = arith.divf %66, %67 : vector<8x128xf32>
    %69 = arith.mulf %11, %68 : vector<8x128xf32>
    %70 = arith.subf %69, %13 : vector<8x128xf32>
    %71 = vector.extract_strided_slice %70 {offsets = [0, 0], sizes = [8, 32], strides = [1, 1]} : vector<8x128xf32> to vector<8x32xf32>
    %72 = vector.extract_strided_slice %70 {offsets = [0, 32], sizes = [8, 32], strides = [1, 1]} : vector<8x128xf32> to vector<8x32xf32>
    %73 = vector.extract_strided_slice %70 {offsets = [0, 64], sizes = [8, 32], strides = [1, 1]} : vector<8x128xf32> to vector<8x32xf32>
    %74 = vector.extract_strided_slice %70 {offsets = [0, 96], sizes = [8, 32], strides = [1, 1]} : vector<8x128xf32> to vector<8x32xf32>
    %75 = arith.mulf %72, %46 : vector<8x32xf32>
    %76 = arith.mulf %71, %73 : vector<8x32xf32>
    %77 = arith.addf %75, %76 : vector<8x32xf32>
    %78 = math.tanh %77 : vector<8x32xf32>
    %79 = arith.mulf %74, %78 : vector<8x32xf32>
    %80 = arith.truncf %79 : vector<8x32xf32> to vector<8x32xbf16>
    %cst_30 = arith.constant dense<0.000000e+00> : vector<8x128xf32>
    %81 = tpu.matmul %80, %0, %cst_30 {dimension_numbers = #tpu.dot_dimension_numbers<[1], [0], [0], [1], [0, 0, 1, 1], [], []>} : vector<8x32xbf16>, vector<32x128xbf16>, vector<8x128xf32> -> vector<8x128xf32>
    %82 = vector.broadcast %2 : vector<1x128xf32> to vector<8x128xf32>
    %83 = arith.addf %81, %82 : vector<8x128xf32>
    %c1_31 = arith.constant 1 : index
    %84 = arith.index_cast %c1_i32 : i32 to index
    %c0_32 = arith.constant 0 : index
    %c0_33 = arith.constant 0 : index
    %85 = vector.load %arg8[%c1_31, %84, %c0_32, %c0_33] : memref<2x8x8x128xf32, #tpu.memory_space<vmem>>, vector<1x1x8x128xf32>
    %86 = vector.shape_cast %85 : vector<1x1x8x128xf32> to vector<8x128xf32>
    %87 = vector.shape_cast %83 : vector<8x128xf32> to vector<1x1x8x128xf32>
    tpu.vector_store %arg8[%c1_31, %84, %c0_32, %c0_33], %87 {strides = array<i32>} : memref<2x8x8x128xf32, #tpu.memory_space<vmem>>, vector<1x1x8x128xf32>,
    %c2_i32 = arith.constant 2 : i32
    %c0_34 = arith.constant 0 : index
    %88 = arith.index_cast %c2_i32 : i32 to index
    %c0_35 = arith.constant 0 : index
    %c0_36 = arith.constant 0 : index
    %89 = vector.load %arg8[%c0_34, %88, %c0_35, %c0_36] : memref<2x8x8x128xf32, #tpu.memory_space<vmem>>, vector<1x1x8x128xf32>
    %90 = vector.shape_cast %89 : vector<1x1x8x128xf32> to vector<8x128xf32>
    %91 = arith.truncf %79 : vector<8x32xf32> to vector<8x32xbf16>
    %cst_37 = arith.constant dense<0.000000e+00> : vector<8x128xf32>
    %92 = tpu.matmul %91, %1, %cst_37 {dimension_numbers = #tpu.dot_dimension_numbers<[1], [0], [0], [1], [0, 0, 1, 1], [], []>} : vector<8x32xbf16>, vector<32x128xbf16>, vector<8x128xf32> -> vector<8x128xf32>
    %93 = arith.addf %90, %92 : vector<8x128xf32>
    %94 = arith.mulf %11, %93 : vector<8x128xf32>
    %95 = arith.negf %94 : vector<8x128xf32>
    %96 = math.exp %95 : vector<8x128xf32>
    %cst_38 = arith.constant 1.000000e+00 : f32
    %97 = vector.broadcast %cst_38 : f32 to vector<8x128xf32>
    %98 = arith.addf %97, %96 : vector<8x128xf32>
    %99 = arith.divf %97, %98 : vector<8x128xf32>
    %100 = arith.mulf %11, %99 : vector<8x128xf32>
    %101 = arith.subf %100, %13 : vector<8x128xf32>
    %102 = vector.extract_strided_slice %101 {offsets = [0, 0], sizes = [8, 32], strides = [1, 1]} : vector<8x128xf32> to vector<8x32xf32>
    %103 = vector.extract_strided_slice %101 {offsets = [0, 32], sizes = [8, 32], strides = [1, 1]} : vector<8x128xf32> to vector<8x32xf32>
    %104 = vector.extract_strided_slice %101 {offsets = [0, 64], sizes = [8, 32], strides = [1, 1]} : vector<8x128xf32> to vector<8x32xf32>
    %105 = vector.extract_strided_slice %101 {offsets = [0, 96], sizes = [8, 32], strides = [1, 1]} : vector<8x128xf32> to vector<8x32xf32>
    %106 = arith.mulf %103, %77 : vector<8x32xf32>
    %107 = arith.mulf %102, %104 : vector<8x32xf32>
    %108 = arith.addf %106, %107 : vector<8x32xf32>
    %109 = math.tanh %108 : vector<8x32xf32>
    %110 = arith.mulf %105, %109 : vector<8x32xf32>
    %111 = arith.truncf %110 : vector<8x32xf32> to vector<8x32xbf16>
    %cst_39 = arith.constant dense<0.000000e+00> : vector<8x128xf32>
    %112 = tpu.matmul %111, %0, %cst_39 {dimension_numbers = #tpu.dot_dimension_numbers<[1], [0], [0], [1], [0, 0, 1, 1], [], []>} : vector<8x32xbf16>, vector<32x128xbf16>, vector<8x128xf32> -> vector<8x128xf32>
    %113 = vector.broadcast %2 : vector<1x128xf32> to vector<8x128xf32>
    %114 = arith.addf %112, %113 : vector<8x128xf32>
    %c1_40 = arith.constant 1 : index
    %115 = arith.index_cast %c2_i32 : i32 to index
    %c0_41 = arith.constant 0 : index
    %c0_42 = arith.constant 0 : index
    %116 = vector.load %arg8[%c1_40, %115, %c0_41, %c0_42] : memref<2x8x8x128xf32, #tpu.memory_space<vmem>>, vector<1x1x8x128xf32>
    %117 = vector.shape_cast %116 : vector<1x1x8x128xf32> to vector<8x128xf32>
    %118 = vector.shape_cast %114 : vector<8x128xf32> to vector<1x1x8x128xf32>
    tpu.vector_store %arg8[%c1_40, %115, %c0_41, %c0_42], %118 {strides = array<i32>} : memref<2x8x8x128xf32, #tpu.memory_space<vmem>>, vector<1x1x8x128xf32>,
    %c3_i32 = arith.constant 3 : i32
    %c0_43 = arith.constant 0 : index
    %119 = arith.index_cast %c3_i32 : i32 to index
    %c0_44 = arith.constant 0 : index
    %c0_45 = arith.constant 0 : index
    %120 = vector.load %arg8[%c0_43, %119, %c0_44, %c0_45] : memref<2x8x8x128xf32, #tpu.memory_space<vmem>>, vector<1x1x8x128xf32>
    %121 = vector.shape_cast %120 : vector<1x1x8x128xf32> to vector<8x128xf32>
    %122 = arith.truncf %110 : vector<8x32xf32> to vector<8x32xbf16>
    %cst_46 = arith.constant dense<0.000000e+00> : vector<8x128xf32>
    %123 = tpu.matmul %122, %1, %cst_46 {dimension_numbers = #tpu.dot_dimension_numbers<[1], [0], [0], [1], [0, 0, 1, 1], [], []>} : vector<8x32xbf16>, vector<32x128xbf16>, vector<8x128xf32> -> vector<8x128xf32>
    %124 = arith.addf %121, %123 : vector<8x128xf32>
    %125 = arith.mulf %11, %124 : vector<8x128xf32>
    %126 = arith.negf %125 : vector<8x128xf32>
    %127 = math.exp %126 : vector<8x128xf32>
    %cst_47 = arith.constant 1.000000e+00 : f32
    %128 = vector.broadcast %cst_47 : f32 to vector<8x128xf32>
    %129 = arith.addf %128, %127 : vector<8x128xf32>
    %130 = arith.divf %128, %129 : vector<8x128xf32>
    %131 = arith.mulf %11, %130 : vector<8x128xf32>
    %132 = arith.subf %131, %13 : vector<8x128xf32>
    %133 = vector.extract_strided_slice %132 {offsets = [0, 0], sizes = [8, 32], strides = [1, 1]} : vector<8x128xf32> to vector<8x32xf32>
    %134 = vector.extract_strided_slice %132 {offsets = [0, 32], sizes = [8, 32], strides = [1, 1]} : vector<8x128xf32> to vector<8x32xf32>
    %135 = vector.extract_strided_slice %132 {offsets = [0, 64], sizes = [8, 32], strides = [1, 1]} : vector<8x128xf32> to vector<8x32xf32>
    %136 = vector.extract_strided_slice %132 {offsets = [0, 96], sizes = [8, 32], strides = [1, 1]} : vector<8x128xf32> to vector<8x32xf32>
    %137 = arith.mulf %134, %108 : vector<8x32xf32>
    %138 = arith.mulf %133, %135 : vector<8x32xf32>
    %139 = arith.addf %137, %138 : vector<8x32xf32>
    %140 = math.tanh %139 : vector<8x32xf32>
    %141 = arith.mulf %136, %140 : vector<8x32xf32>
    %142 = arith.truncf %141 : vector<8x32xf32> to vector<8x32xbf16>
    %cst_48 = arith.constant dense<0.000000e+00> : vector<8x128xf32>
    %143 = tpu.matmul %142, %0, %cst_48 {dimension_numbers = #tpu.dot_dimension_numbers<[1], [0], [0], [1], [0, 0, 1, 1], [], []>} : vector<8x32xbf16>, vector<32x128xbf16>, vector<8x128xf32> -> vector<8x128xf32>
    %144 = vector.broadcast %2 : vector<1x128xf32> to vector<8x128xf32>
    %145 = arith.addf %143, %144 : vector<8x128xf32>
    %c1_49 = arith.constant 1 : index
    %146 = arith.index_cast %c3_i32 : i32 to index
    %c0_50 = arith.constant 0 : index
    %c0_51 = arith.constant 0 : index
    %147 = vector.load %arg8[%c1_49, %146, %c0_50, %c0_51] : memref<2x8x8x128xf32, #tpu.memory_space<vmem>>, vector<1x1x8x128xf32>
    %148 = vector.shape_cast %147 : vector<1x1x8x128xf32> to vector<8x128xf32>
    %149 = vector.shape_cast %145 : vector<8x128xf32> to vector<1x1x8x128xf32>
    tpu.vector_store %arg8[%c1_49, %146, %c0_50, %c0_51], %149 {strides = array<i32>} : memref<2x8x8x128xf32, #tpu.memory_space<vmem>>, vector<1x1x8x128xf32>,
    %c4_i32 = arith.constant 4 : i32
    %c0_52 = arith.constant 0 : index
    %150 = arith.index_cast %c4_i32 : i32 to index
    %c0_53 = arith.constant 0 : index
    %c0_54 = arith.constant 0 : index
    %151 = vector.load %arg8[%c0_52, %150, %c0_53, %c0_54] : memref<2x8x8x128xf32, #tpu.memory_space<vmem>>, vector<1x1x8x128xf32>
    %152 = vector.shape_cast %151 : vector<1x1x8x128xf32> to vector<8x128xf32>
    %153 = arith.truncf %141 : vector<8x32xf32> to vector<8x32xbf16>
    %cst_55 = arith.constant dense<0.000000e+00> : vector<8x128xf32>
    %154 = tpu.matmul %153, %1, %cst_55 {dimension_numbers = #tpu.dot_dimension_numbers<[1], [0], [0], [1], [0, 0, 1, 1], [], []>} : vector<8x32xbf16>, vector<32x128xbf16>, vector<8x128xf32> -> vector<8x128xf32>
    %155 = arith.addf %152, %154 : vector<8x128xf32>
    %156 = arith.mulf %11, %155 : vector<8x128xf32>
    %157 = arith.negf %156 : vector<8x128xf32>
    %158 = math.exp %157 : vector<8x128xf32>
    %cst_56 = arith.constant 1.000000e+00 : f32
    %159 = vector.broadcast %cst_56 : f32 to vector<8x128xf32>
    %160 = arith.addf %159, %158 : vector<8x128xf32>
    %161 = arith.divf %159, %160 : vector<8x128xf32>
    %162 = arith.mulf %11, %161 : vector<8x128xf32>
    %163 = arith.subf %162, %13 : vector<8x128xf32>
    %164 = vector.extract_strided_slice %163 {offsets = [0, 0], sizes = [8, 32], strides = [1, 1]} : vector<8x128xf32> to vector<8x32xf32>
    %165 = vector.extract_strided_slice %163 {offsets = [0, 32], sizes = [8, 32], strides = [1, 1]} : vector<8x128xf32> to vector<8x32xf32>
    %166 = vector.extract_strided_slice %163 {offsets = [0, 64], sizes = [8, 32], strides = [1, 1]} : vector<8x128xf32> to vector<8x32xf32>
    %167 = vector.extract_strided_slice %163 {offsets = [0, 96], sizes = [8, 32], strides = [1, 1]} : vector<8x128xf32> to vector<8x32xf32>
    %168 = arith.mulf %165, %139 : vector<8x32xf32>
    %169 = arith.mulf %164, %166 : vector<8x32xf32>
    %170 = arith.addf %168, %169 : vector<8x32xf32>
    %171 = math.tanh %170 : vector<8x32xf32>
    %172 = arith.mulf %167, %171 : vector<8x32xf32>
    %173 = arith.truncf %172 : vector<8x32xf32> to vector<8x32xbf16>
    %cst_57 = arith.constant dense<0.000000e+00> : vector<8x128xf32>
    %174 = tpu.matmul %173, %0, %cst_57 {dimension_numbers = #tpu.dot_dimension_numbers<[1], [0], [0], [1], [0, 0, 1, 1], [], []>} : vector<8x32xbf16>, vector<32x128xbf16>, vector<8x128xf32> -> vector<8x128xf32>
    %175 = vector.broadcast %2 : vector<1x128xf32> to vector<8x128xf32>
    %176 = arith.addf %174, %175 : vector<8x128xf32>
    %c1_58 = arith.constant 1 : index
    %177 = arith.index_cast %c4_i32 : i32 to index
    %c0_59 = arith.constant 0 : index
    %c0_60 = arith.constant 0 : index
    %178 = vector.load %arg8[%c1_58, %177, %c0_59, %c0_60] : memref<2x8x8x128xf32, #tpu.memory_space<vmem>>, vector<1x1x8x128xf32>
    %179 = vector.shape_cast %178 : vector<1x1x8x128xf32> to vector<8x128xf32>
    %180 = vector.shape_cast %176 : vector<8x128xf32> to vector<1x1x8x128xf32>
    tpu.vector_store %arg8[%c1_58, %177, %c0_59, %c0_60], %180 {strides = array<i32>} : memref<2x8x8x128xf32, #tpu.memory_space<vmem>>, vector<1x1x8x128xf32>,
    %c5_i32 = arith.constant 5 : i32
    %c0_61 = arith.constant 0 : index
    %181 = arith.index_cast %c5_i32 : i32 to index
    %c0_62 = arith.constant 0 : index
    %c0_63 = arith.constant 0 : index
    %182 = vector.load %arg8[%c0_61, %181, %c0_62, %c0_63] : memref<2x8x8x128xf32, #tpu.memory_space<vmem>>, vector<1x1x8x128xf32>
    %183 = vector.shape_cast %182 : vector<1x1x8x128xf32> to vector<8x128xf32>
    %184 = arith.truncf %172 : vector<8x32xf32> to vector<8x32xbf16>
    %cst_64 = arith.constant dense<0.000000e+00> : vector<8x128xf32>
    %185 = tpu.matmul %184, %1, %cst_64 {dimension_numbers = #tpu.dot_dimension_numbers<[1], [0], [0], [1], [0, 0, 1, 1], [], []>} : vector<8x32xbf16>, vector<32x128xbf16>, vector<8x128xf32> -> vector<8x128xf32>
    %186 = arith.addf %183, %185 : vector<8x128xf32>
    %187 = arith.mulf %11, %186 : vector<8x128xf32>
    %188 = arith.negf %187 : vector<8x128xf32>
    %189 = math.exp %188 : vector<8x128xf32>
    %cst_65 = arith.constant 1.000000e+00 : f32
    %190 = vector.broadcast %cst_65 : f32 to vector<8x128xf32>
    %191 = arith.addf %190, %189 : vector<8x128xf32>
    %192 = arith.divf %190, %191 : vector<8x128xf32>
    %193 = arith.mulf %11, %192 : vector<8x128xf32>
    %194 = arith.subf %193, %13 : vector<8x128xf32>
    %195 = vector.extract_strided_slice %194 {offsets = [0, 0], sizes = [8, 32], strides = [1, 1]} : vector<8x128xf32> to vector<8x32xf32>
    %196 = vector.extract_strided_slice %194 {offsets = [0, 32], sizes = [8, 32], strides = [1, 1]} : vector<8x128xf32> to vector<8x32xf32>
    %197 = vector.extract_strided_slice %194 {offsets = [0, 64], sizes = [8, 32], strides = [1, 1]} : vector<8x128xf32> to vector<8x32xf32>
    %198 = vector.extract_strided_slice %194 {offsets = [0, 96], sizes = [8, 32], strides = [1, 1]} : vector<8x128xf32> to vector<8x32xf32>
    %199 = arith.mulf %196, %170 : vector<8x32xf32>
    %200 = arith.mulf %195, %197 : vector<8x32xf32>
    %201 = arith.addf %199, %200 : vector<8x32xf32>
    %202 = math.tanh %201 : vector<8x32xf32>
    %203 = arith.mulf %198, %202 : vector<8x32xf32>
    %204 = arith.truncf %203 : vector<8x32xf32> to vector<8x32xbf16>
    %cst_66 = arith.constant dense<0.000000e+00> : vector<8x128xf32>
    %205 = tpu.matmul %204, %0, %cst_66 {dimension_numbers = #tpu.dot_dimension_numbers<[1], [0], [0], [1], [0, 0, 1, 1], [], []>} : vector<8x32xbf16>, vector<32x128xbf16>, vector<8x128xf32> -> vector<8x128xf32>
    %206 = vector.broadcast %2 : vector<1x128xf32> to vector<8x128xf32>
    %207 = arith.addf %205, %206 : vector<8x128xf32>
    %c1_67 = arith.constant 1 : index
    %208 = arith.index_cast %c5_i32 : i32 to index
    %c0_68 = arith.constant 0 : index
    %c0_69 = arith.constant 0 : index
    %209 = vector.load %arg8[%c1_67, %208, %c0_68, %c0_69] : memref<2x8x8x128xf32, #tpu.memory_space<vmem>>, vector<1x1x8x128xf32>
    %210 = vector.shape_cast %209 : vector<1x1x8x128xf32> to vector<8x128xf32>
    %211 = vector.shape_cast %207 : vector<8x128xf32> to vector<1x1x8x128xf32>
    tpu.vector_store %arg8[%c1_67, %208, %c0_68, %c0_69], %211 {strides = array<i32>} : memref<2x8x8x128xf32, #tpu.memory_space<vmem>>, vector<1x1x8x128xf32>,
    %c6_i32 = arith.constant 6 : i32
    %c0_70 = arith.constant 0 : index
    %212 = arith.index_cast %c6_i32 : i32 to index
    %c0_71 = arith.constant 0 : index
    %c0_72 = arith.constant 0 : index
    %213 = vector.load %arg8[%c0_70, %212, %c0_71, %c0_72] : memref<2x8x8x128xf32, #tpu.memory_space<vmem>>, vector<1x1x8x128xf32>
    %214 = vector.shape_cast %213 : vector<1x1x8x128xf32> to vector<8x128xf32>
    %215 = arith.truncf %203 : vector<8x32xf32> to vector<8x32xbf16>
    %cst_73 = arith.constant dense<0.000000e+00> : vector<8x128xf32>
    %216 = tpu.matmul %215, %1, %cst_73 {dimension_numbers = #tpu.dot_dimension_numbers<[1], [0], [0], [1], [0, 0, 1, 1], [], []>} : vector<8x32xbf16>, vector<32x128xbf16>, vector<8x128xf32> -> vector<8x128xf32>
    %217 = arith.addf %214, %216 : vector<8x128xf32>
    %218 = arith.mulf %11, %217 : vector<8x128xf32>
    %219 = arith.negf %218 : vector<8x128xf32>
    %220 = math.exp %219 : vector<8x128xf32>
    %cst_74 = arith.constant 1.000000e+00 : f32
    %221 = vector.broadcast %cst_74 : f32 to vector<8x128xf32>
    %222 = arith.addf %221, %220 : vector<8x128xf32>
    %223 = arith.divf %221, %222 : vector<8x128xf32>
    %224 = arith.mulf %11, %223 : vector<8x128xf32>
    %225 = arith.subf %224, %13 : vector<8x128xf32>
    %226 = vector.extract_strided_slice %225 {offsets = [0, 0], sizes = [8, 32], strides = [1, 1]} : vector<8x128xf32> to vector<8x32xf32>
    %227 = vector.extract_strided_slice %225 {offsets = [0, 32], sizes = [8, 32], strides = [1, 1]} : vector<8x128xf32> to vector<8x32xf32>
    %228 = vector.extract_strided_slice %225 {offsets = [0, 64], sizes = [8, 32], strides = [1, 1]} : vector<8x128xf32> to vector<8x32xf32>
    %229 = vector.extract_strided_slice %225 {offsets = [0, 96], sizes = [8, 32], strides = [1, 1]} : vector<8x128xf32> to vector<8x32xf32>
    %230 = arith.mulf %227, %201 : vector<8x32xf32>
    %231 = arith.mulf %226, %228 : vector<8x32xf32>
    %232 = arith.addf %230, %231 : vector<8x32xf32>
    %233 = math.tanh %232 : vector<8x32xf32>
    %234 = arith.mulf %229, %233 : vector<8x32xf32>
    %235 = arith.truncf %234 : vector<8x32xf32> to vector<8x32xbf16>
    %cst_75 = arith.constant dense<0.000000e+00> : vector<8x128xf32>
    %236 = tpu.matmul %235, %0, %cst_75 {dimension_numbers = #tpu.dot_dimension_numbers<[1], [0], [0], [1], [0, 0, 1, 1], [], []>} : vector<8x32xbf16>, vector<32x128xbf16>, vector<8x128xf32> -> vector<8x128xf32>
    %237 = vector.broadcast %2 : vector<1x128xf32> to vector<8x128xf32>
    %238 = arith.addf %236, %237 : vector<8x128xf32>
    %c1_76 = arith.constant 1 : index
    %239 = arith.index_cast %c6_i32 : i32 to index
    %c0_77 = arith.constant 0 : index
    %c0_78 = arith.constant 0 : index
    %240 = vector.load %arg8[%c1_76, %239, %c0_77, %c0_78] : memref<2x8x8x128xf32, #tpu.memory_space<vmem>>, vector<1x1x8x128xf32>
    %241 = vector.shape_cast %240 : vector<1x1x8x128xf32> to vector<8x128xf32>
    %242 = vector.shape_cast %238 : vector<8x128xf32> to vector<1x1x8x128xf32>
    tpu.vector_store %arg8[%c1_76, %239, %c0_77, %c0_78], %242 {strides = array<i32>} : memref<2x8x8x128xf32, #tpu.memory_space<vmem>>, vector<1x1x8x128xf32>,
    %c7_i32 = arith.constant 7 : i32
    %c0_79 = arith.constant 0 : index
    %243 = arith.index_cast %c7_i32 : i32 to index
    %c0_80 = arith.constant 0 : index
    %c0_81 = arith.constant 0 : index
    %244 = vector.load %arg8[%c0_79, %243, %c0_80, %c0_81] : memref<2x8x8x128xf32, #tpu.memory_space<vmem>>, vector<1x1x8x128xf32>
    %245 = vector.shape_cast %244 : vector<1x1x8x128xf32> to vector<8x128xf32>
    %246 = arith.truncf %234 : vector<8x32xf32> to vector<8x32xbf16>
    %cst_82 = arith.constant dense<0.000000e+00> : vector<8x128xf32>
    %247 = tpu.matmul %246, %1, %cst_82 {dimension_numbers = #tpu.dot_dimension_numbers<[1], [0], [0], [1], [0, 0, 1, 1], [], []>} : vector<8x32xbf16>, vector<32x128xbf16>, vector<8x128xf32> -> vector<8x128xf32>
    %248 = arith.addf %245, %247 : vector<8x128xf32>
    %249 = arith.mulf %11, %248 : vector<8x128xf32>
    %250 = arith.negf %249 : vector<8x128xf32>
    %251 = math.exp %250 : vector<8x128xf32>
    %cst_83 = arith.constant 1.000000e+00 : f32
    %252 = vector.broadcast %cst_83 : f32 to vector<8x128xf32>
    %253 = arith.addf %252, %251 : vector<8x128xf32>
    %254 = arith.divf %252, %253 : vector<8x128xf32>
    %255 = arith.mulf %11, %254 : vector<8x128xf32>
    %256 = arith.subf %255, %13 : vector<8x128xf32>
    %257 = vector.extract_strided_slice %256 {offsets = [0, 0], sizes = [8, 32], strides = [1, 1]} : vector<8x128xf32> to vector<8x32xf32>
    %258 = vector.extract_strided_slice %256 {offsets = [0, 32], sizes = [8, 32], strides = [1, 1]} : vector<8x128xf32> to vector<8x32xf32>
    %259 = vector.extract_strided_slice %256 {offsets = [0, 64], sizes = [8, 32], strides = [1, 1]} : vector<8x128xf32> to vector<8x32xf32>
    %260 = vector.extract_strided_slice %256 {offsets = [0, 96], sizes = [8, 32], strides = [1, 1]} : vector<8x128xf32> to vector<8x32xf32>
    %261 = arith.mulf %258, %232 : vector<8x32xf32>
    %262 = arith.mulf %257, %259 : vector<8x32xf32>
    %263 = arith.addf %261, %262 : vector<8x32xf32>
    %264 = math.tanh %263 : vector<8x32xf32>
    %265 = arith.mulf %260, %264 : vector<8x32xf32>
    %266 = arith.truncf %265 : vector<8x32xf32> to vector<8x32xbf16>
    %cst_84 = arith.constant dense<0.000000e+00> : vector<8x128xf32>
    %267 = tpu.matmul %266, %0, %cst_84 {dimension_numbers = #tpu.dot_dimension_numbers<[1], [0], [0], [1], [0, 0, 1, 1], [], []>} : vector<8x32xbf16>, vector<32x128xbf16>, vector<8x128xf32> -> vector<8x128xf32>
    %268 = vector.broadcast %2 : vector<1x128xf32> to vector<8x128xf32>
    %269 = arith.addf %267, %268 : vector<8x128xf32>
    %c1_85 = arith.constant 1 : index
    %270 = arith.index_cast %c7_i32 : i32 to index
    %c0_86 = arith.constant 0 : index
    %c0_87 = arith.constant 0 : index
    %271 = vector.load %arg8[%c1_85, %270, %c0_86, %c0_87] : memref<2x8x8x128xf32, #tpu.memory_space<vmem>>, vector<1x1x8x128xf32>
    %272 = vector.shape_cast %271 : vector<1x1x8x128xf32> to vector<8x128xf32>
    %273 = vector.shape_cast %269 : vector<8x128xf32> to vector<1x1x8x128xf32>
    tpu.vector_store %arg8[%c1_85, %270, %c0_86, %c0_87], %273 {strides = array<i32>} : memref<2x8x8x128xf32, #tpu.memory_space<vmem>>, vector<1x1x8x128xf32>,
    %c8_i32 = arith.constant 8 : i32
    %c0_88 = arith.constant 0 : index
    %c0_89 = arith.constant 0 : index
    %c0_90 = arith.constant 0 : index
    %274 = vector.load %arg5[%c0_88, %c0_89, %c0_90] : memref<8x2x32xf32, #tpu.memory_space<vmem>>, vector<8x1x32xf32>
    %275 = vector.shape_cast %274 : vector<8x1x32xf32> to vector<8x32xf32>
    %276 = vector.shape_cast %265 : vector<8x32xf32> to vector<8x1x32xf32>
    tpu.vector_store %arg5[%c0_88, %c0_89, %c0_90], %276 {strides = array<i32>} : memref<8x2x32xf32, #tpu.memory_space<vmem>>, vector<8x1x32xf32>,
    %c0_i32_91 = arith.constant 0 : i32
    %c1_92 = arith.constant 1 : index
    %277 = arith.index_cast %c0_i32_91 : i32 to index
    %c0_93 = arith.constant 0 : index
    %c0_94 = arith.constant 0 : index
    %278 = vector.load %arg8[%c1_92, %277, %c0_93, %c0_94] : memref<2x8x8x128xf32, #tpu.memory_space<vmem>>, vector<1x1x8x128xf32>
    %279 = vector.shape_cast %278 : vector<1x1x8x128xf32> to vector<8x128xf32>
    %280 = arith.truncf %265 : vector<8x32xf32> to vector<8x32xbf16>
    %cst_95 = arith.constant dense<0.000000e+00> : vector<8x128xf32>
    %281 = tpu.matmul %280, %1, %cst_95 {dimension_numbers = #tpu.dot_dimension_numbers<[1], [0], [0], [1], [0, 0, 1, 1], [], []>} : vector<8x32xbf16>, vector<32x128xbf16>, vector<8x128xf32> -> vector<8x128xf32>
    %282 = arith.addf %279, %281 : vector<8x128xf32>
    %283 = arith.mulf %11, %282 : vector<8x128xf32>
    %284 = arith.negf %283 : vector<8x128xf32>
    %285 = math.exp %284 : vector<8x128xf32>
    %cst_96 = arith.constant 1.000000e+00 : f32
    %286 = vector.broadcast %cst_96 : f32 to vector<8x128xf32>
    %287 = arith.addf %286, %285 : vector<8x128xf32>
    %288 = arith.divf %286, %287 : vector<8x128xf32>
    %289 = arith.mulf %11, %288 : vector<8x128xf32>
    %290 = arith.subf %289, %13 : vector<8x128xf32>
    %291 = vector.extract_strided_slice %290 {offsets = [0, 0], sizes = [8, 32], strides = [1, 1]} : vector<8x128xf32> to vector<8x32xf32>
    %292 = vector.extract_strided_slice %290 {offsets = [0, 32], sizes = [8, 32], strides = [1, 1]} : vector<8x128xf32> to vector<8x32xf32>
    %293 = vector.extract_strided_slice %290 {offsets = [0, 64], sizes = [8, 32], strides = [1, 1]} : vector<8x128xf32> to vector<8x32xf32>
    %294 = vector.extract_strided_slice %290 {offsets = [0, 96], sizes = [8, 32], strides = [1, 1]} : vector<8x128xf32> to vector<8x32xf32>
    %295 = arith.mulf %292, %263 : vector<8x32xf32>
    %296 = arith.mulf %291, %293 : vector<8x32xf32>
    %297 = arith.addf %295, %296 : vector<8x32xf32>
    %298 = math.tanh %297 : vector<8x32xf32>
    %299 = arith.mulf %294, %298 : vector<8x32xf32>
    %c1_i32_97 = arith.constant 1 : i32
    %c1_98 = arith.constant 1 : index
    %300 = arith.index_cast %c1_i32_97 : i32 to index
    %c0_99 = arith.constant 0 : index
    %c0_100 = arith.constant 0 : index
    %301 = vector.load %arg8[%c1_98, %300, %c0_99, %c0_100] : memref<2x8x8x128xf32, #tpu.memory_space<vmem>>, vector<1x1x8x128xf32>
    %302 = vector.shape_cast %301 : vector<1x1x8x128xf32> to vector<8x128xf32>
    %303 = arith.truncf %299 : vector<8x32xf32> to vector<8x32xbf16>
    %cst_101 = arith.constant dense<0.000000e+00> : vector<8x128xf32>
    %304 = tpu.matmul %303, %1, %cst_101 {dimension_numbers = #tpu.dot_dimension_numbers<[1], [0], [0], [1], [0, 0, 1, 1], [], []>} : vector<8x32xbf16>, vector<32x128xbf16>, vector<8x128xf32> -> vector<8x128xf32>
    %305 = arith.addf %302, %304 : vector<8x128xf32>
    %306 = arith.mulf %11, %305 : vector<8x128xf32>
    %307 = arith.negf %306 : vector<8x128xf32>
    %308 = math.exp %307 : vector<8x128xf32>
    %cst_102 = arith.constant 1.000000e+00 : f32
    %309 = vector.broadcast %cst_102 : f32 to vector<8x128xf32>
    %310 = arith.addf %309, %308 : vector<8x128xf32>
    %311 = arith.divf %309, %310 : vector<8x128xf32>
    %312 = arith.mulf %11, %311 : vector<8x128xf32>
    %313 = arith.subf %312, %13 : vector<8x128xf32>
    %314 = vector.extract_strided_slice %313 {offsets = [0, 0], sizes = [8, 32], strides = [1, 1]} : vector<8x128xf32> to vector<8x32xf32>
    %315 = vector.extract_strided_slice %313 {offsets = [0, 32], sizes = [8, 32], strides = [1, 1]} : vector<8x128xf32> to vector<8x32xf32>
    %316 = vector.extract_strided_slice %313 {offsets = [0, 64], sizes = [8, 32], strides = [1, 1]} : vector<8x128xf32> to vector<8x32xf32>
    %317 = vector.extract_strided_slice %313 {offsets = [0, 96], sizes = [8, 32], strides = [1, 1]} : vector<8x128xf32> to vector<8x32xf32>
    %318 = arith.mulf %315, %297 : vector<8x32xf32>
    %319 = arith.mulf %314, %316 : vector<8x32xf32>
    %320 = arith.addf %318, %319 : vector<8x32xf32>
    %321 = math.tanh %320 : vector<8x32xf32>
    %322 = arith.mulf %317, %321 : vector<8x32xf32>
    %c2_i32_103 = arith.constant 2 : i32
    %c1_104 = arith.constant 1 : index
    %323 = arith.index_cast %c2_i32_103 : i32 to index
    %c0_105 = arith.constant 0 : index
    %c0_106 = arith.constant 0 : index
    %324 = vector.load %arg8[%c1_104, %323, %c0_105, %c0_106] : memref<2x8x8x128xf32, #tpu.memory_space<vmem>>, vector<1x1x8x128xf32>
    %325 = vector.shape_cast %324 : vector<1x1x8x128xf32> to vector<8x128xf32>
    %326 = arith.truncf %322 : vector<8x32xf32> to vector<8x32xbf16>
    %cst_107 = arith.constant dense<0.000000e+00> : vector<8x128xf32>
    %327 = tpu.matmul %326, %1, %cst_107 {dimension_numbers = #tpu.dot_dimension_numbers<[1], [0], [0], [1], [0, 0, 1, 1], [], []>} : vector<8x32xbf16>, vector<32x128xbf16>, vector<8x128xf32> -> vector<8x128xf32>
    %328 = arith.addf %325, %327 : vector<8x128xf32>
    %329 = arith.mulf %11, %328 : vector<8x128xf32>
    %330 = arith.negf %329 : vector<8x128xf32>
    %331 = math.exp %330 : vector<8x128xf32>
    %cst_108 = arith.constant 1.000000e+00 : f32
    %332 = vector.broadcast %cst_108 : f32 to vector<8x128xf32>
    %333 = arith.addf %332, %331 : vector<8x128xf32>
    %334 = arith.divf %332, %333 : vector<8x128xf32>
    %335 = arith.mulf %11, %334 : vector<8x128xf32>
    %336 = arith.subf %335, %13 : vector<8x128xf32>
    %337 = vector.extract_strided_slice %336 {offsets = [0, 0], sizes = [8, 32], strides = [1, 1]} : vector<8x128xf32> to vector<8x32xf32>
    %338 = vector.extract_strided_slice %336 {offsets = [0, 32], sizes = [8, 32], strides = [1, 1]} : vector<8x128xf32> to vector<8x32xf32>
    %339 = vector.extract_strided_slice %336 {offsets = [0, 64], sizes = [8, 32], strides = [1, 1]} : vector<8x128xf32> to vector<8x32xf32>
    %340 = vector.extract_strided_slice %336 {offsets = [0, 96], sizes = [8, 32], strides = [1, 1]} : vector<8x128xf32> to vector<8x32xf32>
    %341 = arith.mulf %338, %320 : vector<8x32xf32>
    %342 = arith.mulf %337, %339 : vector<8x32xf32>
    %343 = arith.addf %341, %342 : vector<8x32xf32>
    %344 = math.tanh %343 : vector<8x32xf32>
    %345 = arith.mulf %340, %344 : vector<8x32xf32>
    %c3_i32_109 = arith.constant 3 : i32
    %c1_110 = arith.constant 1 : index
    %346 = arith.index_cast %c3_i32_109 : i32 to index
    %c0_111 = arith.constant 0 : index
    %c0_112 = arith.constant 0 : index
    %347 = vector.load %arg8[%c1_110, %346, %c0_111, %c0_112] : memref<2x8x8x128xf32, #tpu.memory_space<vmem>>, vector<1x1x8x128xf32>
    %348 = vector.shape_cast %347 : vector<1x1x8x128xf32> to vector<8x128xf32>
    %349 = arith.truncf %345 : vector<8x32xf32> to vector<8x32xbf16>
    %cst_113 = arith.constant dense<0.000000e+00> : vector<8x128xf32>
    %350 = tpu.matmul %349, %1, %cst_113 {dimension_numbers = #tpu.dot_dimension_numbers<[1], [0], [0], [1], [0, 0, 1, 1], [], []>} : vector<8x32xbf16>, vector<32x128xbf16>, vector<8x128xf32> -> vector<8x128xf32>
    %351 = arith.addf %348, %350 : vector<8x128xf32>
    %352 = arith.mulf %11, %351 : vector<8x128xf32>
    %353 = arith.negf %352 : vector<8x128xf32>
    %354 = math.exp %353 : vector<8x128xf32>
    %cst_114 = arith.constant 1.000000e+00 : f32
    %355 = vector.broadcast %cst_114 : f32 to vector<8x128xf32>
    %356 = arith.addf %355, %354 : vector<8x128xf32>
    %357 = arith.divf %355, %356 : vector<8x128xf32>
    %358 = arith.mulf %11, %357 : vector<8x128xf32>
    %359 = arith.subf %358, %13 : vector<8x128xf32>
    %360 = vector.extract_strided_slice %359 {offsets = [0, 0], sizes = [8, 32], strides = [1, 1]} : vector<8x128xf32> to vector<8x32xf32>
    %361 = vector.extract_strided_slice %359 {offsets = [0, 32], sizes = [8, 32], strides = [1, 1]} : vector<8x128xf32> to vector<8x32xf32>
    %362 = vector.extract_strided_slice %359 {offsets = [0, 64], sizes = [8, 32], strides = [1, 1]} : vector<8x128xf32> to vector<8x32xf32>
    %363 = vector.extract_strided_slice %359 {offsets = [0, 96], sizes = [8, 32], strides = [1, 1]} : vector<8x128xf32> to vector<8x32xf32>
    %364 = arith.mulf %361, %343 : vector<8x32xf32>
    %365 = arith.mulf %360, %362 : vector<8x32xf32>
    %366 = arith.addf %364, %365 : vector<8x32xf32>
    %367 = math.tanh %366 : vector<8x32xf32>
    %368 = arith.mulf %363, %367 : vector<8x32xf32>
    %c4_i32_115 = arith.constant 4 : i32
    %c1_116 = arith.constant 1 : index
    %369 = arith.index_cast %c4_i32_115 : i32 to index
    %c0_117 = arith.constant 0 : index
    %c0_118 = arith.constant 0 : index
    %370 = vector.load %arg8[%c1_116, %369, %c0_117, %c0_118] : memref<2x8x8x128xf32, #tpu.memory_space<vmem>>, vector<1x1x8x128xf32>
    %371 = vector.shape_cast %370 : vector<1x1x8x128xf32> to vector<8x128xf32>
    %372 = arith.truncf %368 : vector<8x32xf32> to vector<8x32xbf16>
    %cst_119 = arith.constant dense<0.000000e+00> : vector<8x128xf32>
    %373 = tpu.matmul %372, %1, %cst_119 {dimension_numbers = #tpu.dot_dimension_numbers<[1], [0], [0], [1], [0, 0, 1, 1], [], []>} : vector<8x32xbf16>, vector<32x128xbf16>, vector<8x128xf32> -> vector<8x128xf32>
    %374 = arith.addf %371, %373 : vector<8x128xf32>
    %375 = arith.mulf %11, %374 : vector<8x128xf32>
    %376 = arith.negf %375 : vector<8x128xf32>
    %377 = math.exp %376 : vector<8x128xf32>
    %cst_120 = arith.constant 1.000000e+00 : f32
    %378 = vector.broadcast %cst_120 : f32 to vector<8x128xf32>
    %379 = arith.addf %378, %377 : vector<8x128xf32>
    %380 = arith.divf %378, %379 : vector<8x128xf32>
    %381 = arith.mulf %11, %380 : vector<8x128xf32>
    %382 = arith.subf %381, %13 : vector<8x128xf32>
    %383 = vector.extract_strided_slice %382 {offsets = [0, 0], sizes = [8, 32], strides = [1, 1]} : vector<8x128xf32> to vector<8x32xf32>
    %384 = vector.extract_strided_slice %382 {offsets = [0, 32], sizes = [8, 32], strides = [1, 1]} : vector<8x128xf32> to vector<8x32xf32>
    %385 = vector.extract_strided_slice %382 {offsets = [0, 64], sizes = [8, 32], strides = [1, 1]} : vector<8x128xf32> to vector<8x32xf32>
    %386 = vector.extract_strided_slice %382 {offsets = [0, 96], sizes = [8, 32], strides = [1, 1]} : vector<8x128xf32> to vector<8x32xf32>
    %387 = arith.mulf %384, %366 : vector<8x32xf32>
    %388 = arith.mulf %383, %385 : vector<8x32xf32>
    %389 = arith.addf %387, %388 : vector<8x32xf32>
    %390 = math.tanh %389 : vector<8x32xf32>
    %391 = arith.mulf %386, %390 : vector<8x32xf32>
    %c5_i32_121 = arith.constant 5 : i32
    %c1_122 = arith.constant 1 : index
    %392 = arith.index_cast %c5_i32_121 : i32 to index
    %c0_123 = arith.constant 0 : index
    %c0_124 = arith.constant 0 : index
    %393 = vector.load %arg8[%c1_122, %392, %c0_123, %c0_124] : memref<2x8x8x128xf32, #tpu.memory_space<vmem>>, vector<1x1x8x128xf32>
    %394 = vector.shape_cast %393 : vector<1x1x8x128xf32> to vector<8x128xf32>
    %395 = arith.truncf %391 : vector<8x32xf32> to vector<8x32xbf16>
    %cst_125 = arith.constant dense<0.000000e+00> : vector<8x128xf32>
    %396 = tpu.matmul %395, %1, %cst_125 {dimension_numbers = #tpu.dot_dimension_numbers<[1], [0], [0], [1], [0, 0, 1, 1], [], []>} : vector<8x32xbf16>, vector<32x128xbf16>, vector<8x128xf32> -> vector<8x128xf32>
    %397 = arith.addf %394, %396 : vector<8x128xf32>
    %398 = arith.mulf %11, %397 : vector<8x128xf32>
    %399 = arith.negf %398 : vector<8x128xf32>
    %400 = math.exp %399 : vector<8x128xf32>
    %cst_126 = arith.constant 1.000000e+00 : f32
    %401 = vector.broadcast %cst_126 : f32 to vector<8x128xf32>
    %402 = arith.addf %401, %400 : vector<8x128xf32>
    %403 = arith.divf %401, %402 : vector<8x128xf32>
    %404 = arith.mulf %11, %403 : vector<8x128xf32>
    %405 = arith.subf %404, %13 : vector<8x128xf32>
    %406 = vector.extract_strided_slice %405 {offsets = [0, 0], sizes = [8, 32], strides = [1, 1]} : vector<8x128xf32> to vector<8x32xf32>
    %407 = vector.extract_strided_slice %405 {offsets = [0, 32], sizes = [8, 32], strides = [1, 1]} : vector<8x128xf32> to vector<8x32xf32>
    %408 = vector.extract_strided_slice %405 {offsets = [0, 64], sizes = [8, 32], strides = [1, 1]} : vector<8x128xf32> to vector<8x32xf32>
    %409 = vector.extract_strided_slice %405 {offsets = [0, 96], sizes = [8, 32], strides = [1, 1]} : vector<8x128xf32> to vector<8x32xf32>
    %410 = arith.mulf %407, %389 : vector<8x32xf32>
    %411 = arith.mulf %406, %408 : vector<8x32xf32>
    %412 = arith.addf %410, %411 : vector<8x32xf32>
    %413 = math.tanh %412 : vector<8x32xf32>
    %414 = arith.mulf %409, %413 : vector<8x32xf32>
    %c6_i32_127 = arith.constant 6 : i32
    %c1_128 = arith.constant 1 : index
    %415 = arith.index_cast %c6_i32_127 : i32 to index
    %c0_129 = arith.constant 0 : index
    %c0_130 = arith.constant 0 : index
    %416 = vector.load %arg8[%c1_128, %415, %c0_129, %c0_130] : memref<2x8x8x128xf32, #tpu.memory_space<vmem>>, vector<1x1x8x128xf32>
    %417 = vector.shape_cast %416 : vector<1x1x8x128xf32> to vector<8x128xf32>
    %418 = arith.truncf %414 : vector<8x32xf32> to vector<8x32xbf16>
    %cst_131 = arith.constant dense<0.000000e+00> : vector<8x128xf32>
    %419 = tpu.matmul %418, %1, %cst_131 {dimension_numbers = #tpu.dot_dimension_numbers<[1], [0], [0], [1], [0, 0, 1, 1], [], []>} : vector<8x32xbf16>, vector<32x128xbf16>, vector<8x128xf32> -> vector<8x128xf32>
    %420 = arith.addf %417, %419 : vector<8x128xf32>
    %421 = arith.mulf %11, %420 : vector<8x128xf32>
    %422 = arith.negf %421 : vector<8x128xf32>
    %423 = math.exp %422 : vector<8x128xf32>
    %cst_132 = arith.constant 1.000000e+00 : f32
    %424 = vector.broadcast %cst_132 : f32 to vector<8x128xf32>
    %425 = arith.addf %424, %423 : vector<8x128xf32>
    %426 = arith.divf %424, %425 : vector<8x128xf32>
    %427 = arith.mulf %11, %426 : vector<8x128xf32>
    %428 = arith.subf %427, %13 : vector<8x128xf32>
    %429 = vector.extract_strided_slice %428 {offsets = [0, 0], sizes = [8, 32], strides = [1, 1]} : vector<8x128xf32> to vector<8x32xf32>
    %430 = vector.extract_strided_slice %428 {offsets = [0, 32], sizes = [8, 32], strides = [1, 1]} : vector<8x128xf32> to vector<8x32xf32>
    %431 = vector.extract_strided_slice %428 {offsets = [0, 64], sizes = [8, 32], strides = [1, 1]} : vector<8x128xf32> to vector<8x32xf32>
    %432 = vector.extract_strided_slice %428 {offsets = [0, 96], sizes = [8, 32], strides = [1, 1]} : vector<8x128xf32> to vector<8x32xf32>
    %433 = arith.mulf %430, %412 : vector<8x32xf32>
    %434 = arith.mulf %429, %431 : vector<8x32xf32>
    %435 = arith.addf %433, %434 : vector<8x32xf32>
    %436 = math.tanh %435 : vector<8x32xf32>
    %437 = arith.mulf %432, %436 : vector<8x32xf32>
    %c7_i32_133 = arith.constant 7 : i32
    %c1_134 = arith.constant 1 : index
    %438 = arith.index_cast %c7_i32_133 : i32 to index
    %c0_135 = arith.constant 0 : index
    %c0_136 = arith.constant 0 : index
    %439 = vector.load %arg8[%c1_134, %438, %c0_135, %c0_136] : memref<2x8x8x128xf32, #tpu.memory_space<vmem>>, vector<1x1x8x128xf32>
    %440 = vector.shape_cast %439 : vector<1x1x8x128xf32> to vector<8x128xf32>
    %441 = arith.truncf %437 : vector<8x32xf32> to vector<8x32xbf16>
    %cst_137 = arith.constant dense<0.000000e+00> : vector<8x128xf32>
    %442 = tpu.matmul %441, %1, %cst_137 {dimension_numbers = #tpu.dot_dimension_numbers<[1], [0], [0], [1], [0, 0, 1, 1], [], []>} : vector<8x32xbf16>, vector<32x128xbf16>, vector<8x128xf32> -> vector<8x128xf32>
    %443 = arith.addf %440, %442 : vector<8x128xf32>
    %444 = arith.mulf %11, %443 : vector<8x128xf32>
    %445 = arith.negf %444 : vector<8x128xf32>
    %446 = math.exp %445 : vector<8x128xf32>
    %cst_138 = arith.constant 1.000000e+00 : f32
    %447 = vector.broadcast %cst_138 : f32 to vector<8x128xf32>
    %448 = arith.addf %447, %446 : vector<8x128xf32>
    %449 = arith.divf %447, %448 : vector<8x128xf32>
    %450 = arith.mulf %11, %449 : vector<8x128xf32>
    %451 = arith.subf %450, %13 : vector<8x128xf32>
    %452 = vector.extract_strided_slice %451 {offsets = [0, 0], sizes = [8, 32], strides = [1, 1]} : vector<8x128xf32> to vector<8x32xf32>
    %453 = vector.extract_strided_slice %451 {offsets = [0, 32], sizes = [8, 32], strides = [1, 1]} : vector<8x128xf32> to vector<8x32xf32>
    %454 = vector.extract_strided_slice %451 {offsets = [0, 64], sizes = [8, 32], strides = [1, 1]} : vector<8x128xf32> to vector<8x32xf32>
    %455 = vector.extract_strided_slice %451 {offsets = [0, 96], sizes = [8, 32], strides = [1, 1]} : vector<8x128xf32> to vector<8x32xf32>
    %456 = arith.mulf %453, %435 : vector<8x32xf32>
    %457 = arith.mulf %452, %454 : vector<8x32xf32>
    %458 = arith.addf %456, %457 : vector<8x32xf32>
    %459 = math.tanh %458 : vector<8x32xf32>
    %460 = arith.mulf %455, %459 : vector<8x32xf32>
    %c8_i32_139 = arith.constant 8 : i32
    %c0_140 = arith.constant 0 : index
    %c1_141 = arith.constant 1 : index
    %c0_142 = arith.constant 0 : index
    %461 = vector.load %arg5[%c0_140, %c1_141, %c0_142] : memref<8x2x32xf32, #tpu.memory_space<vmem>>, vector<8x1x32xf32>
    %462 = vector.shape_cast %461 : vector<8x1x32xf32> to vector<8x32xf32>
    %463 = vector.shape_cast %460 : vector<8x32xf32> to vector<8x1x32xf32>
    tpu.vector_store %arg5[%c0_140, %c1_141, %c0_142], %463 {strides = array<i32>} : memref<8x2x32xf32, #tpu.memory_space<vmem>>, vector<8x1x32xf32>,
    %c0_143 = arith.constant 0 : index
    %c0_144 = arith.constant 0 : index
    %464 = vector.load %arg6[%c0_143, %c0_144] : memref<8x32xf32, #tpu.memory_space<vmem>>, vector<8x32xf32>
    tpu.vector_store %arg6[%c0_143, %c0_144], %460 {strides = array<i32>} : memref<8x32xf32, #tpu.memory_space<vmem>>, vector<8x32xf32>,
    %c0_145 = arith.constant 0 : index
    %c0_146 = arith.constant 0 : index
    %465 = vector.load %arg7[%c0_145, %c0_146] : memref<8x32xf32, #tpu.memory_space<vmem>>, vector<8x32xf32>
    tpu.vector_store %arg7[%c0_145, %c0_146], %458 {strides = array<i32>} : memref<8x32xf32, #tpu.memory_space<vmem>>, vector<8x32xf32>,
    return
  }
  func.func @transform_0(%arg0: i32) -> (i32, i32, i32) {
    %c0_i32 = arith.constant 0 : i32
    %c0_i32_0 = arith.constant 0 : i32
    %c0_i32_1 = arith.constant 0 : i32
    return %c0_i32, %arg0, %c0_i32_0 : i32, i32, i32
  }
  func.func @transform_1(%arg0: i32) -> (i32, i32) {
    %c0_i32 = arith.constant 0 : i32
    %c0_i32_0 = arith.constant 0 : i32
    %c0_i32_1 = arith.constant 0 : i32
    return %c0_i32, %c0_i32_0 : i32, i32
  }
  func.func @transform_2(%arg0: i32) -> (i32, i32) {
    %c0_i32 = arith.constant 0 : i32
    %c0_i32_0 = arith.constant 0 : i32
    %c0_i32_1 = arith.constant 0 : i32
    return %c0_i32, %c0_i32_0 : i32, i32
  }
  func.func @transform_3(%arg0: i32) -> (i32, i32) {
    %c0_i32 = arith.constant 0 : i32
    %c0_i32_0 = arith.constant 0 : i32
    %c0_i32_1 = arith.constant 0 : i32
    return %c0_i32, %c0_i32_0 : i32, i32
  }
  func.func @transform_4(%arg0: i32) -> (i32, i32, i32) {
    %c0_i32 = arith.constant 0 : i32
    %c0_i32_0 = arith.constant 0 : i32
    %c0_i32_1 = arith.constant 0 : i32
    return %arg0, %c0_i32, %c0_i32_0 : i32, i32, i32
  }
  func.func @transform_5(%arg0: i32) -> (i32, i32) {
    %c0_i32 = arith.constant 0 : i32
    %c0_i32_0 = arith.constant 0 : i32
    return %arg0, %c0_i32 : i32, i32
  }
  func.func @transform_6(%arg0: i32) -> (i32, i32) {
    %c0_i32 = arith.constant 0 : i32
    %c0_i32_0 = arith.constant 0 : i32
    return %arg0, %c0_i32 : i32, i32
  }
}

</mosaic_0001>

<bundles_post_ra>
// kernel: tpu_custom_call.1
= control target key start
LH: loop header
LB: loop body
LE: loop exit
PB: predicated region body
PF: predicated region fallthrough
CT: control target
= control target key end

     0   :  { %12 = vsyncpa [#allocation4], 0  ;;  %s3229_s0 = inlined_call_operand.hbm [shape: f32[8,8,32], index: 0, kind: input, shape index: {}]   ;;  %s3230_s1 = inlined_call_operand.hbm [shape: bf16[32,128], index: 1, kind: input, shape index: {}]   ;;  %s3231_s2 = inlined_call_operand.hbm [shape: bf16[32,128], index: 2, kind: input, shape index: {}]   ;;  %s3232_s3 = inlined_call_operand.vmem [shape: f32[1,128], index: 3, kind: input, shape index: {}]   ;;  %s3233_s4 = inlined_call_operand.hbm [shape: f32[8,2,32], index: 4, kind: output, shape index: {0}]   ;;  %s3234_s5 = inlined_call_operand.hbm [shape: f32[8,32], index: 5, kind: output, shape index: {1}]   ;;  %s3235_s6 = inlined_call_operand.hbm [shape: f32[8,32], index: 6, kind: output, shape index: {2}]  }
   0x1   :  { %13 = vsyncpa [#allocation7], 0 }
   0x2   :  { %14 = vsyncpa [#allocation5], 0 }
   0x3   :  { %15 = vsyncpa [#allocation11], 0  ;;  %s2653_s21 = smov [#allocation6]   ;;  %s2513_s25 = scalar_lea.hbm %s3230_s1, 256 }
   0x4   :  { %s33_s22 = sshll.u32 %s2653_s21, 4  ;;  %p2514_p0 = scmp.ne.s32.totalorder %s3230_s1, %s2513_s25  ;;  %s34_s22 = int_to_ptr.vmem [resolvable:$true] %s33_s22 }
   0x5   :  { %p2517_p1 = scmp.lt.u32.totalorder %s2513_s25, %s3230_s1 }
   0x7   :  { %p2519_p2 = pnand %p2517_p1, %p2514_p0 }
   0x9   :  { %2522 = shalt.err (!%p2519_p2)
}
   0xa   :  { %s2523_s30 = scalar_lea.vmem %s34_s22, 256  ;;  %p2528_p4 = scmp.lt.s32.totalorder %s34_s22, %s34_s22 }
   0xb   :  { %p2524_p3 = scmp.ne.s32.totalorder %s34_s22, %s2523_s30  ;;  %p2529_p5 = scmp.lt.s32.totalorder %s2523_s30, %s2523_s30 }
   0xd   :  { %p2530_p6 = por %p2529_p5, %p2528_p4 }
   0xf   :  { %p2531_p7 = pnand %p2530_p6, %p2524_p3 }
  0x11   :  { %2534 = shalt.err (!%p2531_p7)
}
  0x12   :  { %s2654_s7 = smov 64   ;;  %s2655_s8 = smov 4  }
  0x13   :  { %39 = dma.hbm_to_vmem [thread:$0]  %s3230_s1, 256, %s34_s22, [#allocation7], %s2654_s7, %s2654_s7, %s2655_s8  }
  0x14   :  { %s2656_s11 = smov [#allocation3]   ;;  %s2535_s15 = scalar_lea.hbm %s3229_s0, 1024 }
  0x15   :  { %s21_s12 = sshll.u32 %s2656_s11, 4  ;;  %p2536_p8 = scmp.ne.s32.totalorder %s3229_s0, %s2535_s15  ;;  %s22_s12 = int_to_ptr.vmem [resolvable:$true] %s21_s12 }
  0x16   :  { %p2539_p9 = scmp.lt.u32.totalorder %s2535_s15, %s3229_s0 }
  0x18   :  { %p2541_p10 = pnand %p2539_p9, %p2536_p8 }
  0x1a   :  { %2544 = shalt.err (!%p2541_p10)
}
  0x1b   :  { %s2545_s20 = scalar_lea.vmem %s22_s12, 1024  ;;  %p2550_p12 = scmp.lt.s32.totalorder %s22_s12, %s22_s12 }
  0x1c   :  { %p2546_p11 = scmp.ne.s32.totalorder %s22_s12, %s2545_s20  ;;  %p2551_p13 = scmp.lt.s32.totalorder %s2545_s20, %s2545_s20 }
  0x1e   :  { %p2552_p0 = por %p2551_p13, %p2550_p12 }
  0x20   :  { %p2553_p1 = pnand %p2552_p0, %p2546_p11 }
  0x22   :  { %2556 = shalt.err (!%p2553_p1)
}
  0x23   :  { %s2657_s1 = smov 128   ;;  %s2658_s21 = smov 8  }
  0x24   :  { %27 = dma.hbm_to_vmem [thread:$0]  %s3229_s0, 1024, %s22_s12, [#allocation4], %s2657_s1, %s2657_s1, %s2658_s21  }
  0x25   :  { %s2659_s24 = smov [#allocation8]   ;;  %s2557_s28 = scalar_lea.hbm %s3231_s2, 256 }
  0x26   :  { %s45_s25 = sshll.u32 %s2659_s24, 4  ;;  %p2558_p2 = scmp.ne.s32.totalorder %s3231_s2, %s2557_s28  ;;  %s46_s25 = int_to_ptr.vmem [resolvable:$true] %s45_s25 }
  0x27   :  { %p2561_p3 = scmp.lt.u32.totalorder %s2557_s28, %s3231_s2 }
  0x29   :  { %p2563_p4 = pnand %p2561_p3, %p2558_p2 }
  0x2b   :  { %2566 = shalt.err (!%p2563_p4)
}
  0x2c   :  { %s2567_s11 = scalar_lea.vmem %s46_s25, 256  ;;  %p2572_p6 = scmp.lt.s32.totalorder %s46_s25, %s46_s25 }
  0x2d   :  { %p2568_p5 = scmp.ne.s32.totalorder %s46_s25, %s2567_s11  ;;  %p2573_p7 = scmp.lt.s32.totalorder %s2567_s11, %s2567_s11 }
  0x2f   :  { %p2574_p8 = por %p2573_p7, %p2572_p6 }
  0x31   :  { %p2575_p9 = pnand %p2574_p8, %p2568_p5 }
  0x33   :  { %2578 = shalt.err (!%p2575_p9)
}
  0x34   :  { %51 = dma.hbm_to_vmem [thread:$0]  %s3231_s2, 256, %s46_s25, [#allocation7], %s2654_s7, %s2654_s7, %s2655_s8  }
  0x35   :  { %2645 = dma.done.wait [#allocation4], 1024  }
  0x36   :  { %2646 = vsyncadd [#allocation4], 4294966272 }
  0x37   :  { %2647 = dma.done.wait [#allocation7], 512  }
  0x38   :  { %2648 = vsyncadd [#allocation7], 4294966784  ;;  %v2660_v0 = vmov 0.0   ;;  %vm2661_vm0 = vmmov 0   ;;  %v2751_v1 = vld [vmem:[#allocation6] sm:$0xff]   ;;  %v2753_v2 = vld [vmem:[#allocation6 + $0x8] sm:$0xff]   ;;  %v73_v21 = vlaneseq }
  0x39   :  { %2225 = vmatprep.subr.bf16.mxu1 %v2660_v0  ;;  %2229 = vmatprep.mubr.msk.bf16.mxu1 %vm2661_vm0, %v2660_v0  ;;  %v80_v3 = vld [vmem:[#allocation3] sm:$0xff]  ;;  %v81_v4 = vld [vmem:[#allocation3 + $0x8] sm:$0xff]  ;;  %vm110_vm1 = vcmask 261120   ;;  %v82_v5 = vld [vmem:[#allocation3 + $0x10] sm:$0xff]  ;;  %v2662_v17 = vmov 0   ;;  %v2663_v30 = vmov 1.0  }
  0x3a   :  { %2157 = vmatprep.subr.bf16.mxu0 %v2751_v1  ;;  %2226 = vmatpush3.bf16.msra.mxu1 %v2751_v1  ;;  %v88_v6 = vpack.c.bf16 %v81_v4, %v80_v3  ;;  %v83_v7 = vld [vmem:[#allocation3 + $0x18] sm:$0xff]  ;;  %v84_v8 = vld [vmem:[#allocation3 + $0x20] sm:$0xff]  ;;  %v85_v9 = vld [vmem:[#allocation3 + $0x28] sm:$0xff]  ;;  %v74_v23 = vand.u32 127, %v73_v21  ;;  %s2664_s13 = smov 32   ;;  %vm1260_vm5 = vcmask 253952  }
  0x3b   :  { %2158 = vmatpush3.bf16.msra.mxu0 %v2751_v1  ;;  %2227 = vmatprep.subr.bf16.mxu1 %v2660_v0  ;;  %v89_v10 = vpack.c.bf16 %v83_v7, %v82_v5  ;;  %v2763_v11 = vld [vmem:[#allocation8] sm:$0xff]   ;;  %v90_v12 = vpack.c.bf16 %v85_v9, %v84_v8  ;;  %v87_v14 = vld [vmem:[#allocation3 + $0x38] sm:$0xff]  ;;  %v2800_v28 = vld [vmem:[%s3232_s3] ss:$0 sm:$0xff] }
  0x3c   :  { %2159 = vmatprep.subr.bf16.mxu0 %v2753_v2  ;;  %2161 = vmatprep.mubr.msk.bf16.mxu0 %vm110_vm1, %v88_v6  ;;  %v86_v13 = vld [vmem:[#allocation3 + $0x30] sm:$0xff]  ;;  %v2770_v15 = vld [vmem:[#allocation8 + $0x8] sm:$0xff]   ;;  %vm75_vm2 = vcmp.ge.s32.totalorder %v74_v23, 64  ;;  %vm76_vm3 = vcmp.lt.s32.totalorder %v74_v23, 96 }
  0x3d   :  { %v91_v16 = vpack.c.bf16 %v87_v14, %v86_v13  ;;  %vm77_vm4 = vmand %vm75_vm2, %vm76_vm3 }
  0x3e   :  { %2228 = vmatpush3.bf16.msra.mxu1 %v2753_v2  ;;  %v2803_v31 = vsel %vm77_vm4, 2.0, %v2663_v30 }
  0x3f   :  { %2160 = vmatpush3.bf16.msra.mxu0 %v2753_v2  ;;  %2241 = vmatprep.subr.bf16.mxu1 %v2660_v0  ;;  %v2807_v41 = vadd.f32 -1.0, %v2803_v31 }
  0x40   :  { %2169 = vmatprep.subr.bf16.mxu0 %v2660_v0 }
  0x42   :  { %2162 = vmatmul.mubr.msk.bf16.vlgmr.msra.gmra.mrb[0].mxu0 %vm110_vm1, %v89_v10 }
  0x43   :  { %2170 = vmatpush3.bf16.msra.mxu0 %v2763_v11  ;;  %2165 = vmatprep.mubr.msk.bf16.mxu0 %vm110_vm1, %v90_v12 }
  0x44   :  { %2171 = vmatprep.subr.bf16.mxu0 %v2660_v0 }
  0x47   :  { %2172 = vmatpush3.bf16.msra.mxu0 %v2770_v15 }
  0x48   :  { %2177 = vmatprep.subr.bf16.mxu0 %v2660_v0 }
  0x4a   :  { %2166 = vmatmul.mubr.msk.bf16.gmra.mrb[4].mxu0 %vm110_vm1, %v91_v16 }
  0x4b   :  { %2173 = vmatprep.mubr.msk.bf16.mxu0 %vm2661_vm0, %v2660_v0 }
  0x52   :  { %2174 = vmatmul.mubr.bf16.vlgmr.msra.gmra.mrb[8].mxu0 %v2662_v17 }
  0x53   :  { %2178 = vmatpush3.bf16.msra.mxu0 %v2751_v1  ;;  %2181 = vmatprep.mubr.msk.bf16.mxu0 %vm2661_vm0, %v2660_v0 }
  0x54   :  { %2179 = vmatprep.subr.bf16.mxu0 %v2660_v0 }
  0x57   :  { %2180 = vmatpush3.bf16.msra.mxu0 %v2753_v2 }
  0x58   :  { %2185 = vmatprep.subr.bf16.mxu0 %v2660_v0 }
 0x115   :  { %v2784_v18 = vpop.f32.mrb[0].mxu0 }
 0x116   :  { %v157_v19 = vpop.f32.mrb[1].mxu0 }
 0x117   :  { %v2786_v20 = vpop.f32.mrb[2].mxu0  ;;  %v158_v29 = vadd.f32 %v2800_v28, %v157_v19 }
 0x118   :  { %v160_v22 = vpop.f32.mrb[3].mxu0 }
 0x119   :  { %v161_v59 = vadd.f32 %v2800_v28, %v160_v22 }
 0x11d   :  { %v2789_v24 = vpop.f32.mrb[4].mxu0 }
 0x11e   :  { %v2791_v25 = vpop.f32.mrb[5].mxu0 }
 0x11f   :  { %v2793_v26 = vpop.f32.mrb[6].mxu0 }
 0x120   :  { %v2795_v27 = vpop.f32.mrb[7].mxu0 }
 0x125   :  { %v246_v32 = vpop.f32.mrb[8].mxu0 }
 0x126   :  { %v252_v33 = vadd.f32 %v246_v32, %v158_v29  ;;  %v2175_v34 = vpop.f32.mrb[9].mxu0 }
 0x127   :  { %v249_v35 = vpop.f32.mrb[10].mxu0 }
 0x128   :  { %v253_v36 = vmul.f32 %v252_v33, %v2803_v31  ;;  %v2176_v37 = vpop.f32.mrb[11].mxu0 }
 0x12a   :  { %v2040_v38 = vmul.f32 -1.442695, %v253_v36  ;;  %v166_v36 = vadd.f32 %v2784_v18, %v2800_v28 }
 0x12c   :  { %2414 = vpow2.f32 %v2040_v38 }
 0x136   :  { %v2415_v39 = vpop.eup %2414 }
 0x137   :  { %v257_v40 = vadd.f32 1.0, %v2415_v39 }
 0x139   :  { %2416 = vrcp.f32 %v257_v40 }
 0x143   :  { %v2417_v42 = vpop.eup %2416 }
 0x144   :  { %v260_v43 = vmul.f32 %v2417_v42, %v2803_v31 }
 0x146   :  { %v261_v44 = vsub.f32 %v260_v43, %v2807_v41 }
 0x148   :  { %264 = vrot.lane.b32.xlu0 %v261_v44, %s2654_s7  ;;  %v262_v47 = vmul.f32 0.0, %v261_v44 }
 0x1ba   :  { %v265_v45 = vpop.permute.xlu0 %264 }
 0x1bb   :  { %v267_v46 = vmul.f32 %v265_v45, %v261_v44 }
 0x1bd   :  { %269 = vrot.lane.b32.xlu0 %v267_v46, %s2664_s13 }
 0x22f   :  { %v270_v48 = vpop.permute.xlu0 %269 }
 0x230   :  { %v272_v49 = vadd.f32 %v270_v48, %v262_v47 }
 0x232   :  { %2418 = vtanh.f32 %v272_v49 }
 0x23c   :  { %v2419_v50 = vpop.eup %2418 }
 0x23d   :  { %275 = vrot.lane.b32.xlu1 %v2419_v50, %s2654_s7 }
 0x2af   :  { %v276_v51 = vpop.permute.xlu1 %275 }
 0x2b0   :  { %v278_v52 = vmul.f32 %v276_v51, %v261_v44 }
 0x2b2   :  { %v279_v53 = vpack.c.bf16 %v278_v52, %v278_v52 }
 0x2b4   :  { %281 = vrot.lane.b32.xlu1 %v279_v53, %s2664_s13 }
 0x326   :  { %v282_v54 = vpop.permute.xlu1 %281 }
 0x327   :  { %2182 = vmatmul.mubr.msk.bf16.vlgmr.msra.gmra.mrb[12].mxu0 %vm110_vm1, %v282_v54 }
 0x328   :  { %2186 = vmatpush3.bf16.msra.mxu0 %v2763_v11  ;;  %2189 = vmatprep.mubr.msk.bf16.mxu0 %vm2661_vm0, %v2660_v0 }
 0x329   :  { %2187 = vmatprep.subr.bf16.mxu0 %v2660_v0 }
 0x32c   :  { %2188 = vmatpush3.bf16.msra.mxu0 %v2770_v15 }
 0x32d   :  { %2193 = vmatprep.subr.bf16.mxu0 %v2660_v0 }
 0x32f   :  { %2190 = vmatmul.mubr.msk.bf16.vlgmr.msra.gmra.mrb[16].mxu0 %vm110_vm1, %v282_v54 }
 0x330   :  { %2194 = vmatpush3.bf16.msra.mxu0 %v2751_v1  ;;  %2197 = vmatprep.mubr.msk.bf16.mxu0 %vm2661_vm0, %v2660_v0 }
 0x331   :  { %2195 = vmatprep.subr.bf16.mxu0 %v2660_v0 }
 0x334   :  { %2196 = vmatpush3.bf16.msra.mxu0 %v2753_v2 }
 0x335   :  { %2201 = vmatprep.subr.bf16.mxu0 %v2660_v0 }
 0x3fa   :  { %v2829_v55 = vpop.f32.mrb[12].mxu0 }
 0x3fb   :  { %v2183_v56 = vpop.f32.mrb[13].mxu0 }
 0x3fc   :  { %v323_v57 = vpop.f32.mrb[14].mxu0 }
 0x3fd   :  { %v2184_v58 = vpop.f32.mrb[15].mxu0 }
 0x402   :  { %v364_v60 = vpop.f32.mrb[16].mxu0 }
 0x403   :  { %v370_v61 = vadd.f32 %v364_v60, %v161_v59  ;;  %v2191_v62 = vpop.f32.mrb[17].mxu0 }
 0x404   :  { %v367_v63 = vpop.f32.mrb[18].mxu0 }
 0x405   :  { %v371_v3 = vmul.f32 %v370_v61, %v2803_v31  ;;  %v2192_v4 = vpop.f32.mrb[19].mxu0 }
 0x407   :  { %v2043_v5 = vmul.f32 -1.442695, %v371_v3  ;;  %v169_v3 = vadd.f32 %v2786_v20, %v2800_v28 }
 0x409   :  { %2420 = vpow2.f32 %v2043_v5 }
 0x413   :  { %v2421_v6 = vpop.eup %2420 }
 0x414   :  { %v375_v7 = vadd.f32 1.0, %v2421_v6 }
 0x416   :  { %2422 = vrcp.f32 %v375_v7 }
 0x420   :  { %v2423_v8 = vpop.eup %2422 }
 0x421   :  { %v378_v9 = vmul.f32 %v2423_v8, %v2803_v31 }
 0x423   :  { %v379_v10 = vsub.f32 %v378_v9, %v2807_v41 }
 0x425   :  { %382 = vrot.lane.b32.xlu0 %v379_v10, %s2654_s7  ;;  %v380_v14 = vmul.f32 %v379_v10, %v272_v49 }
 0x497   :  { %v383_v12 = vpop.permute.xlu0 %382 }
 0x498   :  { %v385_v13 = vmul.f32 %v383_v12, %v379_v10 }
 0x49a   :  { %387 = vrot.lane.b32.xlu1 %v385_v13, %s2664_s13 }
 0x50c   :  { %v388_v16 = vpop.permute.xlu1 %387 }
 0x50d   :  { %v390_v17 = vadd.f32 %v388_v16, %v380_v14 }
 0x50f   :  { %2424 = vtanh.f32 %v390_v17 }
 0x519   :  { %v2425_v19 = vpop.eup %2424 }
 0x51a   :  { %393 = vrot.lane.b32.xlu0 %v2425_v19, %s2654_s7 }
 0x58c   :  { %v394_v22 = vpop.permute.xlu0 %393 }
 0x58d   :  { %v396_v23 = vmul.f32 %v394_v22, %v379_v10 }
 0x58f   :  { %v397_v29 = vpack.c.bf16 %v396_v23, %v396_v23 }
 0x591   :  { %399 = vrot.lane.b32.xlu1 %v397_v29, %s2664_s13 }
 0x603   :  { %v400_v30 = vpop.permute.xlu1 %399 }
 0x604   :  { %2198 = vmatmul.mubr.msk.bf16.vlgmr.msra.gmra.mrb[20].mxu0 %vm110_vm1, %v400_v30 }
 0x605   :  { %2202 = vmatpush3.bf16.msra.mxu0 %v2763_v11  ;;  %2205 = vmatprep.mubr.msk.bf16.mxu0 %vm2661_vm0, %v2660_v0 }
 0x606   :  { %2203 = vmatprep.subr.bf16.mxu0 %v2660_v0 }
 0x609   :  { %2204 = vmatpush3.bf16.msra.mxu0 %v2770_v15 }
 0x60a   :  { %2209 = vmatprep.subr.bf16.mxu0 %v2660_v0 }
 0x60c   :  { %2206 = vmatmul.mubr.msk.bf16.vlgmr.msra.gmra.mrb[24].mxu0 %vm110_vm1, %v400_v30 }
 0x60d   :  { %2210 = vmatpush3.bf16.msra.mxu0 %v2751_v1  ;;  %2213 = vmatprep.mubr.msk.bf16.mxu0 %vm2661_vm0, %v2660_v0 }
 0x60e   :  { %2211 = vmatprep.subr.bf16.mxu0 %v2660_v0 }
 0x611   :  { %2212 = vmatpush3.bf16.msra.mxu0 %v2753_v2 }
 0x612   :  { %2217 = vmatprep.subr.bf16.mxu0 %v2660_v0 }
 0x6d7   :  { %v2853_v32 = vpop.f32.mrb[20].mxu0 }
 0x6d8   :  { %v2199_v33 = vpop.f32.mrb[21].mxu0 }
 0x6d9   :  { %v441_v34 = vpop.f32.mrb[22].mxu0 }
 0x6da   :  { %v2200_v35 = vpop.f32.mrb[23].mxu0 }
 0x6df   :  { %v482_v37 = vpop.f32.mrb[24].mxu0 }
 0x6e0   :  { %v488_v38 = vadd.f32 %v482_v37, %v166_v36  ;;  %v2207_v39 = vpop.f32.mrb[25].mxu0  ;;  %v174_v37 = vadd.f32 %v2800_v28, %v2791_v25 }
 0x6e1   :  { %v485_v40 = vpop.f32.mrb[26].mxu0 }
 0x6e2   :  { %v489_v42 = vmul.f32 %v488_v38, %v2803_v31  ;;  %v2208_v43 = vpop.f32.mrb[27].mxu0 }
 0x6e4   :  { %v2046_v44 = vmul.f32 -1.442695, %v489_v42 }
 0x6e6   :  { %2426 = vpow2.f32 %v2046_v44 }
 0x6f0   :  { %v2427_v45 = vpop.eup %2426 }
 0x6f1   :  { %v493_v46 = vadd.f32 1.0, %v2427_v45 }
 0x6f3   :  { %2428 = vrcp.f32 %v493_v46 }
 0x6fd   :  { %v2429_v47 = vpop.eup %2428 }
 0x6fe   :  { %v496_v48 = vmul.f32 %v2429_v47, %v2803_v31 }
 0x700   :  { %v497_v49 = vsub.f32 %v496_v48, %v2807_v41 }
 0x702   :  { %500 = vrot.lane.b32.xlu0 %v497_v49, %s2654_s7  ;;  %v498_v51 = vmul.f32 %v497_v49, %v390_v17 }
 0x774   :  { %v501_v18 = vpop.permute.xlu0 %500 }
 0x775   :  { %v503_v50 = vmul.f32 %v501_v18, %v497_v49 }
 0x777   :  { %505 = vrot.lane.b32.xlu1 %v503_v50, %s2664_s13 }
 0x7e9   :  { %v506_v52 = vpop.permute.xlu1 %505 }
 0x7ea   :  { %v508_v53 = vadd.f32 %v506_v52, %v498_v51 }
 0x7ec   :  { %2430 = vtanh.f32 %v508_v53 }
 0x7f6   :  { %v2431_v54 = vpop.eup %2430 }
 0x7f7   :  { %511 = vrot.lane.b32.xlu0 %v2431_v54, %s2654_s7 }
 0x869   :  { %v512_v56 = vpop.permute.xlu0 %511 }
 0x86a   :  { %v514_v57 = vmul.f32 %v512_v56, %v497_v49 }
 0x86c   :  { %v515_v58 = vpack.c.bf16 %v514_v57, %v514_v57 }
 0x86e   :  { %517 = vrot.lane.b32.xlu1 %v515_v58, %s2664_s13 }
 0x8e0   :  { %v518_v59 = vpop.permute.xlu1 %517 }
 0x8e1   :  { %2214 = vmatmul.mubr.msk.bf16.vlgmr.msra.gmra.mrb[28].mxu0 %vm110_vm1, %v518_v59 }
 0x8e2   :  { %2218 = vmatpush3.bf16.msra.mxu0 %v2763_v11  ;;  %2221 = vmatprep.mubr.msk.bf16.mxu0 %vm2661_vm0, %v2660_v0 }
 0x8e3   :  { %2219 = vmatprep.subr.bf16.mxu0 %v2660_v0 }
 0x8e6   :  { %2220 = vmatpush3.bf16.msra.mxu0 %v2770_v15 }
 0x8e7   :  { %2233 = vmatprep.subr.bf16.mxu0 %v2660_v0 }
 0x8e9   :  { %2222 = vmatmul.mubr.msk.bf16.vlgmr.msra.gmra.mrb[32].mxu0 %vm110_vm1, %v518_v59 }
 0x8ea   :  { %2234 = vmatpush3.bf16.msra.mxu0 %v2763_v11  ;;  %2237 = vmatprep.mubr.msk.bf16.mxu0 %vm2661_vm0, %v2660_v0 }
 0x8eb   :  { %2235 = vmatprep.subr.bf16.mxu0 %v2660_v0 }
 0x8ee   :  { %2236 = vmatpush3.bf16.msra.mxu0 %v2770_v15 }
 0x8ef   :  { %2249 = vmatprep.subr.bf16.mxu0 %v2660_v0 }
 0x9b4   :  { %v2878_v60 = vpop.f32.mrb[28].mxu0 }
 0x9b5   :  { %v2215_v61 = vpop.f32.mrb[29].mxu0 }
 0x9b6   :  { %v559_v62 = vpop.f32.mrb[30].mxu0  ;;  %v177_v61 = vadd.f32 %v2800_v28, %v2795_v27 }
 0x9b7   :  { %v2216_v63 = vpop.f32.mrb[31].mxu0 }
 0x9bc   :  { %v600_v4 = vpop.f32.mrb[32].mxu0 }
 0x9bd   :  { %v606_v5 = vadd.f32 %v600_v4, %v169_v3  ;;  %v2223_v6 = vpop.f32.mrb[33].mxu0 }
 0x9be   :  { %v603_v7 = vpop.f32.mrb[34].mxu0 }
 0x9bf   :  { %v607_v8 = vmul.f32 %v606_v5, %v2803_v31  ;;  %v2224_v9 = vpop.f32.mrb[35].mxu0 }
 0x9c1   :  { %v2049_v10 = vmul.f32 -1.442695, %v607_v8 }
 0x9c3   :  { %2432 = vpow2.f32 %v2049_v10 }
 0x9cd   :  { %v2433_v12 = vpop.eup %2432 }
 0x9ce   :  { %v611_v13 = vadd.f32 1.0, %v2433_v12 }
 0x9d0   :  { %2434 = vrcp.f32 %v611_v13 }
 0x9da   :  { %v2435_v14 = vpop.eup %2434 }
 0x9db   :  { %v614_v16 = vmul.f32 %v2435_v14, %v2803_v31 }
 0x9dd   :  { %v615_v17 = vsub.f32 %v614_v16, %v2807_v41 }
 0x9df   :  { %618 = vrot.lane.b32.xlu0 %v615_v17, %s2654_s7  ;;  %v616_v22 = vmul.f32 %v615_v17, %v508_v53 }
 0xa51   :  { %v619_v20 = vpop.permute.xlu0 %618 }
 0xa52   :  { %v621_v19 = vmul.f32 %v619_v20, %v615_v17 }
 0xa54   :  { %623 = vrot.lane.b32.xlu1 %v621_v19, %s2664_s13 }
 0xac6   :  { %v624_v23 = vpop.permute.xlu1 %623 }
 0xac7   :  { %v626_v29 = vadd.f32 %v624_v23, %v616_v22 }
 0xac9   :  { %2436 = vtanh.f32 %v626_v29 }
 0xad3   :  { %v2437_v30 = vpop.eup %2436 }
 0xad4   :  { %629 = vrot.lane.b32.xlu0 %v2437_v30, %s2654_s7 }
 0xb46   :  { %v630_v33 = vpop.permute.xlu0 %629 }
 0xb47   :  { %v632_v34 = vmul.f32 %v630_v33, %v615_v17  ;;  %v182_v33 = vadd.f32 %v2789_v24, %v2800_v28 }
 0xb49   :  { %v633_v35 = vpack.c.bf16 %v632_v34, %v632_v34 }
 0xb4b   :  { %635 = vrot.lane.b32.xlu1 %v633_v35, %s2664_s13 }
 0xbbd   :  { %v636_v36 = vpop.permute.xlu1 %635 }
 0xbbe   :  { %2230 = vmatmul.mubr.msk.bf16.vlgmr.msra.gmra.mrb[0].mxu1 %vm110_vm1, %v636_v36  ;;  %2238 = vmatmul.mubr.msk.bf16.vlgmr.msra.gmra.mrb[36].mxu0 %vm110_vm1, %v636_v36 }
 0xbbf   :  { %2242 = vmatpush3.bf16.msra.mxu1 %v2751_v1  ;;  %2250 = vmatpush3.bf16.msra.mxu0 %v2763_v11 }
 0xbc0   :  { %2243 = vmatprep.subr.bf16.mxu1 %v2660_v0  ;;  %2251 = vmatprep.subr.bf16.mxu0 %v2660_v0 }
 0xbc1   :  { %2245 = vmatprep.mubr.msk.bf16.mxu1 %vm2661_vm0, %v2660_v0  ;;  %2253 = vmatprep.mubr.msk.bf16.mxu0 %vm2661_vm0, %v2660_v0 }
 0xbc3   :  { %2244 = vmatpush3.bf16.msra.mxu1 %v2753_v2  ;;  %2252 = vmatpush3.bf16.msra.mxu0 %v2770_v15 }
 0xbc4   :  { %2257 = vmatprep.subr.bf16.mxu1 %v2660_v0  ;;  %2265 = vmatprep.subr.bf16.mxu0 %v2660_v0 }
 0xc91   :  { %v718_v38 = vpop.f32.mrb[36].mxu0 }
 0xc92   :  { %v724_v39 = vadd.f32 %v718_v38, %v174_v37  ;;  %v2239_v40 = vpop.f32.mrb[37].mxu0 }
 0xc93   :  { %v721_v42 = vpop.f32.mrb[38].mxu0 }
 0xc94   :  { %v725_v43 = vmul.f32 %v724_v39, %v2803_v31  ;;  %v2240_v44 = vpop.f32.mrb[39].mxu0 }
 0xc96   :  { %v2052_v45 = vmul.f32 -1.442695, %v725_v43 }
 0xc98   :  { %2438 = vpow2.f32 %v2052_v45 }
 0xca2   :  { %v2439_v46 = vpop.eup %2438 }
 0xca3   :  { %v729_v47 = vadd.f32 1.0, %v2439_v46 }
 0xca5   :  { %2440 = vrcp.f32 %v729_v47 }
 0xcaf   :  { %v2441_v48 = vpop.eup %2440 }
 0xcb0   :  { %v732_v49 = vmul.f32 %v2441_v48, %v2803_v31 }
 0xcb2   :  { %v733_v18 = vsub.f32 %v732_v49, %v2807_v41 }
 0xcb4   :  { %736 = vrot.lane.b32.xlu0 %v733_v18, %s2654_s7  ;;  %v734_v51 = vmul.f32 %v733_v18, %v626_v29 }
 0xd26   :  { %v737_v25 = vpop.permute.xlu0 %736 }
 0xd27   :  { %v739_v50 = vmul.f32 %v737_v25, %v733_v18 }
 0xd29   :  { %741 = vrot.lane.b32.xlu1 %v739_v50, %s2664_s13 }
 0xd9b   :  { %v742_v52 = vpop.permute.xlu1 %741 }
 0xd9c   :  { %v744_v53 = vadd.f32 %v742_v52, %v734_v51 }
 0xd9e   :  { %2442 = vtanh.f32 %v744_v53 }
 0xda8   :  { %v2443_v54 = vpop.eup %2442 }
 0xda9   :  { %747 = vrot.lane.b32.xlu0 %v2443_v54, %s2654_s7  ;;  %v185_v54 = vadd.f32 %v2793_v26, %v2800_v28 }
 0xe1b   :  { %v748_v56 = vpop.permute.xlu0 %747 }
 0xe1c   :  { %v750_v57 = vmul.f32 %v748_v56, %v733_v18 }
 0xe1e   :  { %v751_v58 = vpack.c.bf16 %v750_v57, %v750_v57 }
 0xe20   :  { %753 = vrot.lane.b32.xlu1 %v751_v58, %s2664_s13 }
 0xe92   :  { %v754_v59 = vpop.permute.xlu1 %753 }
 0xe93   :  { %2246 = vmatmul.mubr.msk.bf16.vlgmr.msra.gmra.mrb[4].mxu1 %vm110_vm1, %v754_v59  ;;  %2254 = vmatmul.mubr.msk.bf16.vlgmr.msra.gmra.mrb[40].mxu0 %vm110_vm1, %v754_v59 }
 0xe94   :  { %2258 = vmatpush3.bf16.msra.mxu1 %v2751_v1  ;;  %2266 = vmatpush3.bf16.msra.mxu0 %v2763_v11 }
 0xe95   :  { %2259 = vmatprep.subr.bf16.mxu1 %v2660_v0  ;;  %2267 = vmatprep.subr.bf16.mxu0 %v2660_v0 }
 0xe96   :  { %2261 = vmatprep.mubr.msk.bf16.mxu1 %vm2661_vm0, %v2660_v0  ;;  %2269 = vmatprep.mubr.msk.bf16.mxu0 %vm2661_vm0, %v2660_v0 }
 0xe98   :  { %2260 = vmatpush3.bf16.msra.mxu1 %v2753_v2  ;;  %2268 = vmatpush3.bf16.msra.mxu0 %v2770_v15 }
 0xe99   :  { %2273 = vmatprep.subr.bf16.mxu1 %v2660_v0  ;;  %2281 = vmatprep.subr.bf16.mxu0 %v2660_v0 }
 0xf66   :  { %v836_v62 = vpop.f32.mrb[40].mxu0 }
 0xf67   :  { %v842_v63 = vadd.f32 %v836_v62, %v177_v61  ;;  %v2255_v3 = vpop.f32.mrb[41].mxu0 }
 0xf68   :  { %v839_v4 = vpop.f32.mrb[42].mxu0 }
 0xf69   :  { %v843_v5 = vmul.f32 %v842_v63, %v2803_v31  ;;  %v2256_v6 = vpop.f32.mrb[43].mxu0 }
 0xf6b   :  { %v2055_v7 = vmul.f32 -1.442695, %v843_v5 }
 0xf6d   :  { %2444 = vpow2.f32 %v2055_v7 }
 0xf77   :  { %v2445_v8 = vpop.eup %2444 }
 0xf78   :  { %v847_v9 = vadd.f32 1.0, %v2445_v8 }
 0xf7a   :  { %2446 = vrcp.f32 %v847_v9 }
 0xf84   :  { %v2447_v10 = vpop.eup %2446 }
 0xf85   :  { %v850_v12 = vmul.f32 %v2447_v10, %v2803_v31 }
 0xf87   :  { %v851_v13 = vsub.f32 %v850_v12, %v2807_v41 }
 0xf89   :  { %854 = vrot.lane.b32.xlu0 %v851_v13, %s2654_s7  ;;  %v852_v16 = vmul.f32 %v851_v13, %v744_v53 }
 0xffb   :  { %v855_v27 = vpop.permute.xlu0 %854 }
 0xffc   :  { %v857_v14 = vmul.f32 %v855_v27, %v851_v13 }
 0xffe   :  { %859 = vrot.lane.b32.xlu1 %v857_v14, %s2664_s13 }
0x1070   :  { %v860_v17 = vpop.permute.xlu1 %859 }
0x1071   :  { %v862_v20 = vadd.f32 %v860_v17, %v852_v16  ;;  %v321_v16 = vadd.f32 %v2800_v28, %v2829_v55 }
0x1073   :  { %2448 = vtanh.f32 %v862_v20 }
0x107d   :  { %v2449_v19 = vpop.eup %2448 }
0x107e   :  { %865 = vrot.lane.b32.xlu0 %v2449_v19, %s2654_s7 }
0x10f0   :  { %v866_v22 = vpop.permute.xlu0 %865 }
0x10f1   :  { %v868_v23 = vmul.f32 %v866_v22, %v851_v13 }
0x10f3   :  { %v869_v29 = vpack.c.bf16 %v868_v23, %v868_v23 }
0x10f5   :  { %871 = vrot.lane.b32.xlu1 %v869_v29, %s2664_s13 }
0x1167   :  { %v872_v30 = vpop.permute.xlu1 %871 }
0x1168   :  { %2262 = vmatmul.mubr.msk.bf16.vlgmr.msra.gmra.mrb[8].mxu1 %vm110_vm1, %v872_v30  ;;  %2270 = vmatmul.mubr.msk.bf16.vlgmr.msra.gmra.mrb[44].mxu0 %vm110_vm1, %v872_v30 }
0x1169   :  { %2274 = vmatpush3.bf16.msra.mxu1 %v2751_v1  ;;  %2282 = vmatpush3.bf16.msra.mxu0 %v2763_v11 }
0x116a   :  { %2275 = vmatprep.subr.bf16.mxu1 %v2660_v0  ;;  %2283 = vmatprep.subr.bf16.mxu0 %v2660_v0 }
0x116b   :  { %2277 = vmatprep.mubr.msk.bf16.mxu1 %vm2661_vm0, %v2660_v0  ;;  %2285 = vmatprep.mubr.msk.bf16.mxu0 %vm2661_vm0, %v2660_v0 }
0x116d   :  { %2276 = vmatpush3.bf16.msra.mxu1 %v2753_v2  ;;  %2284 = vmatpush3.bf16.msra.mxu0 %v2770_v15 }
0x116e   :  { %2289 = vmatprep.subr.bf16.mxu1 %v2660_v0 }
0x123b   :  { %v954_v34 = vpop.f32.mrb[44].mxu0 }
0x123c   :  { %v960_v35 = vadd.f32 %v954_v34, %v182_v33  ;;  %v2271_v36 = vpop.f32.mrb[45].mxu0 }
0x123d   :  { %v957_v37 = vpop.f32.mrb[46].mxu0 }
0x123e   :  { %v961_v38 = vmul.f32 %v960_v35, %v2803_v31  ;;  %v2272_v39 = vpop.f32.mrb[47].mxu0 }
0x1240   :  { %v2058_v40 = vmul.f32 -1.442695, %v961_v38 }
0x1242   :  { %2450 = vpow2.f32 %v2058_v40 }
0x124c   :  { %v2451_v42 = vpop.eup %2450 }
0x124d   :  { %v965_v43 = vadd.f32 1.0, %v2451_v42 }
0x124f   :  { %2452 = vrcp.f32 %v965_v43 }
0x1259   :  { %v2453_v44 = vpop.eup %2452 }
0x125a   :  { %v968_v45 = vmul.f32 %v2453_v44, %v2803_v31 }
0x125c   :  { %v969_v46 = vsub.f32 %v968_v45, %v2807_v41 }
0x125e   :  { %972 = vrot.lane.b32.xlu0 %v969_v46, %s2654_s7  ;;  %v970_v48 = vmul.f32 %v969_v46, %v862_v20 }
0x12d0   :  { %v973_v24 = vpop.permute.xlu0 %972 }
0x12d1   :  { %v975_v47 = vmul.f32 %v973_v24, %v969_v46 }
0x12d3   :  { %977 = vrot.lane.b32.xlu1 %v975_v47, %s2664_s13  ;;  %v439_v47 = vadd.f32 %v2800_v28, %v2853_v32 }
0x1345   :  { %v978_v49 = vpop.permute.xlu1 %977 }
0x1346   :  { %v980_v18 = vadd.f32 %v978_v49, %v970_v48 }
0x1348   :  { %2454 = vtanh.f32 %v980_v18 }
0x1352   :  { %v2455_v25 = vpop.eup %2454 }
0x1353   :  { %983 = vrot.lane.b32.xlu0 %v2455_v25, %s2654_s7 }
0x13c5   :  { %v984_v50 = vpop.permute.xlu0 %983 }
0x13c6   :  { %v986_v51 = vmul.f32 %v984_v50, %v969_v46 }
0x13c8   :  { %v987_v52 = vpack.c.bf16 %v986_v51, %v986_v51 }
0x13ca   :  { %989 = vrot.lane.b32.xlu1 %v987_v52, %s2664_s13 }
0x143c   :  { %v990_v53 = vpop.permute.xlu1 %989 }
0x143d   :  { %2278 = vmatmul.mubr.msk.bf16.vlgmr.msra.gmra.mrb[12].mxu1 %vm110_vm1, %v990_v53  ;;  %2286 = vmatmul.mubr.msk.bf16.vlgmr.msra.gmra.mrb[48].mxu0 %vm110_vm1, %v990_v53 }
0x143e   :  { %2290 = vmatpush3.bf16.msra.mxu1 %v2751_v1  ;;  %2293 = vmatprep.mubr.msk.bf16.mxu1 %vm2661_vm0, %v2660_v0 }
0x143f   :  { %2291 = vmatprep.subr.bf16.mxu1 %v2660_v0 }
0x1442   :  { %2292 = vmatpush3.bf16.msra.mxu1 %v2753_v2 }
0x1443   :  { %2297 = vmatprep.subr.bf16.mxu1 %v2660_v0 }
0x1510   :  { %v1072_v56 = vpop.f32.mrb[48].mxu0 }
0x1511   :  { %v1078_v57 = vadd.f32 %v1072_v56, %v185_v54  ;;  %v2287_v58 = vpop.f32.mrb[49].mxu0 }
0x1512   :  { %v1075_v59 = vpop.f32.mrb[50].mxu0 }
0x1513   :  { %v1079_v61 = vmul.f32 %v1078_v57, %v2803_v31  ;;  %v2288_v62 = vpop.f32.mrb[51].mxu0 }
0x1515   :  { %v2061_v1 = vmul.f32 -1.442695, %v1079_v61 }
0x1517   :  { %2456 = vpow2.f32 %v2061_v1 }
0x1521   :  { %v2457_v63 = vpop.eup %2456 }
0x1522   :  { %v1083_v3 = vadd.f32 1.0, %v2457_v63 }
0x1524   :  { %2458 = vrcp.f32 %v1083_v3 }
0x152e   :  { %v2459_v4 = vpop.eup %2458 }
0x152f   :  { %v1086_v2 = vmul.f32 %v2459_v4, %v2803_v31 }
0x1531   :  { %v1087_v5 = vsub.f32 %v1086_v2, %v2807_v41 }
0x1533   :  { %1090 = vrot.lane.b32.xlu0 %v1087_v5, %s2654_s7  ;;  %v1088_v7 = vmul.f32 %v1087_v5, %v980_v18 }
0x15a5   :  { %v1091_v26 = vpop.permute.xlu0 %1090 }
0x15a6   :  { %v1093_v6 = vmul.f32 %v1091_v26, %v1087_v5  ;;  %v557_v26 = vadd.f32 %v2800_v28, %v2878_v60 }
0x15a8   :  { %1095 = vrot.lane.b32.xlu1 %v1093_v6, %s2664_s13 }
0x161a   :  { %v1096_v8 = vpop.permute.xlu1 %1095 }
0x161b   :  { %v1098_v9 = vadd.f32 %v1096_v8, %v1088_v7 }
0x161d   :  { %2460 = vtanh.f32 %v1098_v9 }
0x1627   :  { %v2461_v10 = vpop.eup %2460 }
0x1628   :  { %1101 = vrot.lane.b32.xlu0 %v2461_v10, %s2654_s7 }
0x169a   :  { %v1102_v12 = vpop.permute.xlu0 %1101 }
0x169b   :  { %v2973_v13 = vmul.f32 %v1102_v12, %v1087_v5 }
0x169d   :  { %v1105_v27 = vpack.c.bf16 %v2973_v13, %v2973_v13 }
0x169f   :  { %1107 = vrot.lane.b32.xlu1 %v1105_v27, %s2664_s13 }
0x1711   :  { %v1108_v14 = vpop.permute.xlu1 %1107 }
0x1712   :  { %2294 = vmatmul.mubr.msk.bf16.vlgmr.msra.gmra.mrb[16].mxu1 %vm110_vm1, %v1108_v14 }
0x1713   :  { %2298 = vmatpush3.bf16.msra.mxu1 %v2763_v11  ;;  %2301 = vmatprep.mubr.msk.bf16.mxu1 %vm2661_vm0, %v2660_v0 }
0x1714   :  { %2299 = vmatprep.subr.bf16.mxu1 %v2660_v0 }
0x1717   :  { %2300 = vmatpush3.bf16.msra.mxu1 %v2770_v15 }
0x1718   :  { %2305 = vmatprep.subr.bf16.mxu1 %v2660_v0 }
0x171a   :  { %2302 = vmatmul.mubr.msk.bf16.vlgmr.msra.gmra.mrb[20].mxu1 %vm110_vm1, %v1108_v14 }
0x171b   :  { %2306 = vmatpush3.bf16.msra.mxu1 %v2763_v11  ;;  %2309 = vmatprep.mubr.msk.bf16.mxu1 %vm2661_vm0, %v2660_v0 }
0x171c   :  { %2307 = vmatprep.subr.bf16.mxu1 %v2660_v0 }
0x171f   :  { %2308 = vmatpush3.bf16.msra.mxu1 %v2770_v15 }
0x1720   :  { %2313 = vmatprep.subr.bf16.mxu1 %v2660_v0 }
0x17ed   :  { %v1304_v17 = vpop.f32.mrb[20].mxu1 }
0x17ee   :  { %v1310_v20 = vadd.f32 %v1304_v17, %v321_v16  ;;  %v2303_v19 = vpop.f32.mrb[21].mxu1 }
0x17ef   :  { %v1307_v22 = vpop.f32.mrb[22].mxu1 }
0x17f0   :  { %v1311_v23 = vmul.f32 %v1310_v20, %v2803_v31  ;;  %v2304_v29 = vpop.f32.mrb[23].mxu1 }
0x17f2   :  { %v2064_v30 = vmul.f32 -1.442695, %v1311_v23 }
0x17f4   :  { %2462 = vpow2.f32 %v2064_v30 }
0x17fe   :  { %v2463_v33 = vpop.eup %2462 }
0x17ff   :  { %v1315_v34 = vadd.f32 1.0, %v2463_v33 }
0x1801   :  { %2464 = vrcp.f32 %v1315_v34 }
0x180b   :  { %v2465_v35 = vpop.eup %2464 }
0x180c   :  { %v1318_v36 = vmul.f32 %v2465_v35, %v2803_v31 }
0x180e   :  { %v1319_v37 = vsub.f32 %v1318_v36, %v2807_v41 }
0x1810   :  { %1322 = vrot.lane.b32.xlu0 %v1319_v37, %s2654_s7  ;;  %v1320_v39 = vmul.f32 %v1319_v37, %v1098_v9 }
0x1882   :  { %v1323_v55 = vpop.permute.xlu0 %1322 }
0x1883   :  { %v1325_v38 = vmul.f32 %v1323_v55, %v1319_v37 }
0x1885   :  { %1327 = vrot.lane.b32.xlu1 %v1325_v38, %s2664_s13 }
0x18f7   :  { %v1328_v40 = vpop.permute.xlu1 %1327 }
0x18f8   :  { %v1330_v42 = vadd.f32 %v1328_v40, %v1320_v39 }
0x18fa   :  { %2466 = vtanh.f32 %v1330_v42 }
0x1904   :  { %v2467_v43 = vpop.eup %2466 }
0x1905   :  { %1333 = vrot.lane.b32.xlu0 %v2467_v43, %s2654_s7 }
0x1977   :  { %v1334_v44 = vpop.permute.xlu0 %1333 }
0x1978   :  { %v1336_v45 = vmul.f32 %v1334_v44, %v1319_v37 }
0x197a   :  { %v1338_v46 = vpack.c.bf16 %v1336_v45, %v1336_v45 }
0x197c   :  { %1340 = vrot.lane.b32.xlu1 %v1338_v46, %s2664_s13 }
0x19ee   :  { %v1341_v24 = vpop.permute.xlu1 %1340 }
0x19ef   :  { %2310 = vmatmul.mubr.msk.bf16.vlgmr.msra.gmra.mrb[24].mxu1 %vm110_vm1, %v1341_v24 }
0x19f0   :  { %2314 = vmatpush3.bf16.msra.mxu1 %v2763_v11  ;;  %2317 = vmatprep.mubr.msk.bf16.mxu1 %vm2661_vm0, %v2660_v0 }
0x19f1   :  { %2315 = vmatprep.subr.bf16.mxu1 %v2660_v0 }
0x19f4   :  { %2316 = vmatpush3.bf16.msra.mxu1 %v2770_v15 }
0x19f5   :  { %2321 = vmatprep.subr.bf16.mxu1 %v2660_v0 }
0x1ac2   :  { %v1379_v48 = vpop.f32.mrb[24].mxu1 }
0x1ac3   :  { %v1385_v49 = vadd.f32 %v1379_v48, %v439_v47  ;;  %v2311_v18 = vpop.f32.mrb[25].mxu1 }
0x1ac4   :  { %v1382_v25 = vpop.f32.mrb[26].mxu1 }
0x1ac5   :  { %v1386_v50 = vmul.f32 %v1385_v49, %v2803_v31  ;;  %v2312_v51 = vpop.f32.mrb[27].mxu1 }
0x1ac7   :  { %v2066_v52 = vmul.f32 -1.442695, %v1386_v50 }
0x1ac9   :  { %2468 = vpow2.f32 %v2066_v52 }
0x1ad3   :  { %v2469_v53 = vpop.eup %2468 }
0x1ad4   :  { %v1390_v54 = vadd.f32 1.0, %v2469_v53 }
0x1ad6   :  { %2470 = vrcp.f32 %v1390_v54 }
0x1ae0   :  { %v2471_v56 = vpop.eup %2470 }
0x1ae1   :  { %v1393_v57 = vmul.f32 %v2471_v56, %v2803_v31  ;;  %v3049_v56 = vld [vmem:[#allocation8] sm:$0xff]  }
0x1ae3   :  { %v1394_v58 = vsub.f32 %v1393_v57, %v2807_v41  ;;  %v3055_v57 = vld [vmem:[#allocation8 + $0x8] sm:$0xff]  }
0x1ae5   :  { %1397 = vrot.lane.b32.xlu0 %v1394_v58, %s2654_s7  ;;  %v1395_v61 = vmul.f32 %v1394_v58, %v1330_v42 }
0x1b57   :  { %v1398_v32 = vpop.permute.xlu0 %1397 }
0x1b58   :  { %v1400_v59 = vmul.f32 %v1398_v32, %v1394_v58 }
0x1b5a   :  { %1402 = vrot.lane.b32.xlu1 %v1400_v59, %s2664_s13 }
0x1bcc   :  { %v1403_v62 = vpop.permute.xlu1 %1402 }
0x1bcd   :  { %v1405_v1 = vadd.f32 %v1403_v62, %v1395_v61 }
0x1bcf   :  { %2472 = vtanh.f32 %v1405_v1 }
0x1bd9   :  { %v2473_v63 = vpop.eup %2472 }
0x1bda   :  { %1408 = vrot.lane.b32.xlu0 %v2473_v63, %s2654_s7 }
0x1c4c   :  { %v1409_v3 = vpop.permute.xlu0 %1408 }
0x1c4d   :  { %v1411_v4 = vmul.f32 %v1409_v3, %v1394_v58 }
0x1c4f   :  { %v1413_v2 = vpack.c.bf16 %v1411_v4, %v1411_v4 }
0x1c51   :  { %1415 = vrot.lane.b32.xlu1 %v1413_v2, %s2664_s13 }
0x1cc3   :  { %v1416_v5 = vpop.permute.xlu1 %1415 }
0x1cc4   :  { %2318 = vmatmul.mubr.msk.bf16.vlgmr.msra.gmra.mrb[28].mxu1 %vm110_vm1, %v1416_v5 }
0x1cc5   :  { %2322 = vmatpush3.bf16.msra.mxu1 %v2763_v11  ;;  %2325 = vmatprep.mubr.msk.bf16.mxu1 %vm2661_vm0, %v2660_v0 }
0x1cc6   :  { %2323 = vmatprep.subr.bf16.mxu1 %v2660_v0 }
0x1cc9   :  { %2324 = vmatpush3.bf16.msra.mxu1 %v2770_v15 }
0x1cca   :  { %2329 = vmatprep.subr.bf16.mxu1 %v2660_v0 }
0x1d97   :  { %v1454_v6 = vpop.f32.mrb[28].mxu1 }
0x1d98   :  { %v1460_v7 = vadd.f32 %v1454_v6, %v557_v26  ;;  %v2319_v8 = vpop.f32.mrb[29].mxu1 }
0x1d99   :  { %v1457_v9 = vpop.f32.mrb[30].mxu1 }
0x1d9a   :  { %v1461_v10 = vmul.f32 %v1460_v7, %v2803_v31  ;;  %v2320_v12 = vpop.f32.mrb[31].mxu1 }
0x1d9c   :  { %v2068_v27 = vmul.f32 -1.442695, %v1461_v10 }
0x1d9e   :  { %2474 = vpow2.f32 %v2068_v27 }
0x1da8   :  { %v2475_v14 = vpop.eup %2474 }
0x1da9   :  { %v1465_v16 = vadd.f32 1.0, %v2475_v14 }
0x1dab   :  { %2476 = vrcp.f32 %v1465_v16 }
0x1db5   :  { %v2477_v17 = vpop.eup %2476 }
0x1db6   :  { %v1468_v20 = vmul.f32 %v2477_v17, %v2803_v31 }
0x1db8   :  { %v1469_v19 = vsub.f32 %v1468_v20, %v2807_v41  ;;  %v3077_v20 = vld [vmem:[%s3232_s3] ss:$0 sm:$0xff]  ;;  %s2666_s3 = smov 96  }
0x1dba   :  { %1472 = vrot.lane.b32.xlu0 %v1469_v19, %s2654_s7  ;;  %v1470_v23 = vmul.f32 %v1469_v19, %v1405_v1 }
0x1e2c   :  { %v1473_v60 = vpop.permute.xlu0 %1472 }
0x1e2d   :  { %v1475_v22 = vmul.f32 %v1473_v60, %v1469_v19 }
0x1e2f   :  { %1477 = vrot.lane.b32.xlu1 %v1475_v22, %s2664_s13 }
0x1ea1   :  { %v1478_v29 = vpop.permute.xlu1 %1477 }
0x1ea2   :  { %v1480_v30 = vadd.f32 %v1478_v29, %v1470_v23 }
0x1ea4   :  { %2478 = vtanh.f32 %v1480_v30 }
0x1eae   :  { %v2479_v33 = vpop.eup %2478 }
0x1eaf   :  { %1483 = vrot.lane.b32.xlu0 %v2479_v33, %s2654_s7 }
0x1f21   :  { %v1484_v34 = vpop.permute.xlu0 %1483 }
0x1f22   :  { %v1486_v35 = vmul.f32 %v1484_v34, %v1469_v19 }
0x1f24   :  { %v1488_v36 = vpack.c.bf16 %v1486_v35, %v1486_v35 }
0x1f26   :  { %1490 = vrot.lane.b32.xlu1 %v1488_v36, %s2664_s13 }
0x1f98   :  { %v1491_v37 = vpop.permute.xlu1 %1490 }
0x1f99   :  { %2326 = vmatmul.mubr.msk.bf16.vlgmr.msra.gmra.mrb[0].mxu1 %vm110_vm1, %v1491_v37 }
0x1f9a   :  { %2330 = vmatpush3.bf16.msra.mxu1 %v2763_v11  ;;  %2333 = vmatprep.mubr.msk.bf16.mxu1 %vm2661_vm0, %v2660_v0 }
0x1f9b   :  { %2331 = vmatprep.subr.bf16.mxu1 %v2660_v0 }
0x1f9e   :  { %2332 = vmatpush3.bf16.msra.mxu1 %v2770_v15 }
0x1f9f   :  { %2337 = vmatprep.subr.bf16.mxu1 %v2660_v0 }
0x206c   :  { %v1529_v55 = vpop.f32.mrb[0].mxu1 }
0x206d   :  { %v2367_v38 = vadd.f32 %v2800_v28, %v1529_v55  ;;  %v2327_v39 = vpop.f32.mrb[1].mxu1 }
0x206e   :  { %v1532_v40 = vpop.f32.mrb[2].mxu1 }
0x206f   :  { %v1536_v42 = vmul.f32 %v2367_v38, %v2803_v31  ;;  %v2328_v43 = vpop.f32.mrb[3].mxu1 }
0x2071   :  { %v2070_v44 = vmul.f32 -1.442695, %v1536_v42 }
0x2073   :  { %2480 = vpow2.f32 %v2070_v44 }
0x207d   :  { %v2481_v11 = vpop.eup %2480 }
0x207e   :  { %v1540_v45 = vadd.f32 1.0, %v2481_v11 }
0x2080   :  { %2482 = vrcp.f32 %v1540_v45 }
0x208a   :  { %v2483_v46 = vpop.eup %2482 }
0x208b   :  { %v1543_v24 = vmul.f32 %v2483_v46, %v2803_v31 }
0x208d   :  { %v1544_v15 = vsub.f32 %v1543_v24, %v2807_v41 }
0x208f   :  { %1547 = vrot.lane.b32.xlu0 %v1544_v15, %s2654_s7  ;;  %v1545_v49 = vmul.f32 %v1544_v15, %v1480_v30 }
0x2101   :  { %v1548_v47 = vpop.permute.xlu0 %1547 }
0x2102   :  { %v1550_v48 = vmul.f32 %v1548_v47, %v1544_v15 }
0x2104   :  { %1552 = vrot.lane.b32.xlu1 %v1550_v48, %s2664_s13 }
0x2176   :  { %v1553_v18 = vpop.permute.xlu1 %1552 }
0x2177   :  { %v1555_v25 = vadd.f32 %v1553_v18, %v1545_v49 }
0x2179   :  { %2484 = vtanh.f32 %v1555_v25 }
0x2183   :  { %v2485_v50 = vpop.eup %2484 }
0x2184   :  { %1558 = vrot.lane.b32.xlu0 %v2485_v50, %s2654_s7 }
0x21f6   :  { %v1559_v51 = vpop.permute.xlu0 %1558 }
0x21f7   :  { %v1561_v52 = vmul.f32 %v1559_v51, %v1544_v15 }
0x21f9   :  { %v1563_v53 = vpack.c.bf16 %v1561_v52, %v1561_v52 }
0x21fb   :  { %1565 = vrot.lane.b32.xlu1 %v1563_v53, %s2664_s13 }
0x226d   :  { %v1566_v54 = vpop.permute.xlu1 %1565 }
0x226e   :  { %2334 = vmatmul.mubr.msk.bf16.vlgmr.msra.gmra.mrb[4].mxu1 %vm110_vm1, %v1566_v54 }
0x226f   :  { %2338 = vmatpush3.bf16.msra.mxu1 %v3049_v56  ;;  %2341 = vmatprep.mubr.msk.bf16.mxu1 %vm2661_vm0, %v2660_v0 }
0x2270   :  { %2339 = vmatprep.subr.bf16.mxu1 %v2660_v0 }
0x2273   :  { %2340 = vmatpush3.bf16.msra.mxu1 %v3055_v57 }
0x2274   :  { %2345 = vmatprep.subr.bf16.mxu1 %v2660_v0 }
0x2341   :  { %v1604_v58 = vpop.f32.mrb[4].mxu1 }
0x2342   :  { %v2368_v32 = vadd.f32 %v2800_v28, %v1604_v58  ;;  %v2335_v59 = vpop.f32.mrb[5].mxu1 }
0x2343   :  { %v1607_v61 = vpop.f32.mrb[6].mxu1 }
0x2344   :  { %v1611_v62 = vmul.f32 %v2368_v32, %v2803_v31  ;;  %v2336_v1 = vpop.f32.mrb[7].mxu1 }
0x2346   :  { %v2072_v63 = vmul.f32 -1.442695, %v1611_v62 }
0x2348   :  { %2486 = vpow2.f32 %v2072_v63 }
0x2352   :  { %v2487_v3 = vpop.eup %2486 }
0x2353   :  { %v1615_v4 = vadd.f32 1.0, %v2487_v3 }
0x2355   :  { %2488 = vrcp.f32 %v1615_v4 }
0x235f   :  { %v2489_v2 = vpop.eup %2488 }
0x2360   :  { %v1618_v5 = vmul.f32 %v2489_v2, %v2803_v31 }
0x2362   :  { %v1619_v26 = vsub.f32 %v1618_v5, %v2807_v41 }
0x2364   :  { %1622 = vrot.lane.b32.xlu0 %v1619_v26, %s2654_s7  ;;  %v1620_v28 = vmul.f32 %v1619_v26, %v1555_v25 }
0x23d6   :  { %v1623_v6 = vpop.permute.xlu0 %1622 }
0x23d7   :  { %v1625_v7 = vmul.f32 %v1623_v6, %v1619_v26 }
0x23d9   :  { %1627 = vrot.lane.b32.xlu1 %v1625_v7, %s2664_s13 }
0x244b   :  { %v1628_v8 = vpop.permute.xlu1 %1627 }
0x244c   :  { %v1630_v9 = vadd.f32 %v1628_v8, %v1620_v28 }
0x244e   :  { %2490 = vtanh.f32 %v1630_v9 }
0x2458   :  { %v2491_v10 = vpop.eup %2490 }
0x2459   :  { %1633 = vrot.lane.b32.xlu0 %v2491_v10, %s2654_s7 }
0x24cb   :  { %v1634_v12 = vpop.permute.xlu0 %1633 }
0x24cc   :  { %v1636_v27 = vmul.f32 %v1634_v12, %v1619_v26 }
0x24ce   :  { %v1638_v14 = vpack.c.bf16 %v1636_v27, %v1636_v27  ;;  %v2665_v27 = vmov 1966171168  }
0x24d0   :  { %1640 = vrot.lane.b32.xlu1 %v1638_v14, %s2664_s13  ;;  %v1157_v14 = vunpack.c.l.s4 %v2665_v27 }
0x2542   :  { %v1641_v16 = vpop.permute.xlu1 %1640 }
0x2543   :  { %2342 = vmatmul.mubr.msk.bf16.vlgmr.msra.gmra.mrb[8].mxu1 %vm110_vm1, %v1641_v16  ;;  %v1158_v16 = vunpack.c.0.s8 %v1157_v14 }
0x2544   :  { %2346 = vmatpush3.bf16.msra.mxu1 %v3049_v56  ;;  %2349 = vmatprep.mubr.msk.bf16.mxu1 %vm2661_vm0, %v2660_v0 }
0x2545   :  { %2347 = vmatprep.subr.bf16.mxu1 %v2660_v0 }
0x2548   :  { %2348 = vmatpush3.bf16.msra.mxu1 %v3055_v57 }
0x2549   :  { %2353 = vmatprep.subr.bf16.mxu1 %v2660_v0 }
0x2616   :  { %v1679_v17 = vpop.f32.mrb[8].mxu1 }
0x2617   :  { %v2369_v19 = vadd.f32 %v3077_v20, %v1679_v17  ;;  %v2343_v60 = vpop.f32.mrb[9].mxu1  ;;  %v1160_v17 = vshrl.u32 %v73_v21, 7 }
0x2618   :  { %v1682_v22 = vpop.f32.mrb[10].mxu1  ;;  %v1155_v60 = vcombine.high %v2973_v13, %v2973_v13 }
0x2619   :  { %v1686_v23 = vmul.f32 %v2369_v19, %v2803_v31  ;;  %v2344_v29 = vpop.f32.mrb[11].mxu1 }
0x261b   :  { %v2074_v30 = vmul.f32 -1.442695, %v1686_v23 }
0x261d   :  { %2492 = vpow2.f32 %v2074_v30  ;;  %v3116_v30 = vsub.s32 0, %v1160_v17 }
0x2627   :  { %v2493_v33 = vpop.eup %2492 }
0x2628   :  { %v1690_v34 = vadd.f32 1.0, %v2493_v33 }
0x262a   :  { %2494 = vrcp.f32 %v1690_v34 }
0x2634   :  { %v2495_v35 = vpop.eup %2494 }
0x2635   :  { %v1693_v36 = vmul.f32 %v2495_v35, %v2803_v31 }
0x2637   :  { %v1694_v37 = vsub.f32 %v1693_v36, %v2807_v41 }
0x2639   :  { %1697 = vrot.lane.b32.xlu0 %v1694_v37, %s2654_s7  ;;  %v1695_v39 = vmul.f32 %v1694_v37, %v1630_v9 }
0x26ab   :  { %v1698_v55 = vpop.permute.xlu0 %1697 }
0x26ac   :  { %v1700_v38 = vmul.f32 %v1698_v55, %v1694_v37 }
0x26ae   :  { %1702 = vrot.lane.b32.xlu1 %v1700_v38, %s2664_s13 }
0x2720   :  { %v1703_v40 = vpop.permute.xlu1 %1702 }
0x2721   :  { %v1705_v42 = vadd.f32 %v1703_v40, %v1695_v39 }
0x2723   :  { %2496 = vtanh.f32 %v1705_v42 }
0x272d   :  { %v2497_v43 = vpop.eup %2496 }
0x272e   :  { %1708 = vrot.lane.b32.xlu0 %v2497_v43, %s2654_s7 }
0x27a0   :  { %v1709_v44 = vpop.permute.xlu0 %1708 }
0x27a1   :  { %v1711_v11 = vmul.f32 %v1709_v44, %v1694_v37 }
0x27a3   :  { %v1713_v45 = vpack.c.bf16 %v1711_v11, %v1711_v11 }
0x27a5   :  { %1715 = vrot.lane.b32.xlu1 %v1713_v45, %s2664_s13 }
0x2817   :  { %v1716_v46 = vpop.permute.xlu1 %1715 }
0x2818   :  { %2350 = vmatmul.mubr.msk.bf16.vlgmr.msra.gmra.mrb[12].mxu1 %vm110_vm1, %v1716_v46 }
0x2819   :  { %2354 = vmatpush3.bf16.msra.mxu1 %v3049_v56  ;;  %2357 = vmatprep.mubr.msk.bf16.mxu1 %vm2661_vm0, %v2660_v0 }
0x281a   :  { %2355 = vmatprep.subr.bf16.mxu1 %v2660_v0 }
0x281d   :  { %2356 = vmatpush3.bf16.msra.mxu1 %v3055_v57 }
0x28eb   :  { %v1754_v24 = vpop.f32.mrb[12].mxu1 }
0x28ec   :  { %v2370_v15 = vadd.f32 %v3077_v20, %v1754_v24  ;;  %v2351_v47 = vpop.f32.mrb[13].mxu1 }
0x28ed   :  { %v1757_v48 = vpop.f32.mrb[14].mxu1 }
0x28ee   :  { %v1761_v49 = vmul.f32 %v2370_v15, %v2803_v31  ;;  %v2352_v18 = vpop.f32.mrb[15].mxu1 }
0x28f0   :  { %v2076_v25 = vmul.f32 -1.442695, %v1761_v49 }
0x28f2   :  { %2498 = vpow2.f32 %v2076_v25 }
0x28fc   :  { %v2499_v50 = vpop.eup %2498 }
0x28fd   :  { %v1765_v51 = vadd.f32 1.0, %v2499_v50 }
0x28ff   :  { %2500 = vrcp.f32 %v1765_v51 }
0x2909   :  { %v2501_v52 = vpop.eup %2500 }
0x290a   :  { %v1768_v53 = vmul.f32 %v2501_v52, %v2803_v31 }
0x290c   :  { %v1769_v0 = vsub.f32 %v1768_v53, %v2807_v41 }
0x290e   :  { %1772 = vrot.lane.b32.xlu0 %v1769_v0, %s2654_s7  ;;  %v1770_v57 = vmul.f32 %v1769_v0, %v1705_v42 }
0x2980   :  { %v1773_v54 = vpop.permute.xlu0 %1772 }
0x2981   :  { %v1775_v56 = vmul.f32 %v1773_v54, %v1769_v0 }
0x2983   :  { %1777 = vrot.lane.b32.xlu1 %v1775_v56, %s2664_s13 }
0x29f5   :  { %v1778_v58 = vpop.permute.xlu1 %1777 }
0x29f6   :  { %v1780_v32 = vadd.f32 %v1778_v58, %v1770_v57 }
0x29f8   :  { %2502 = vtanh.f32 %v1780_v32 }
0x2a02   :  { %v2503_v59 = vpop.eup %2502 }
0x2a03   :  { %1783 = vrot.lane.b32.xlu0 %v2503_v59, %s2654_s7 }
0x2a75   :  { %v1784_v61 = vpop.permute.xlu0 %1783 }
0x2a76   :  { %v1786_v62 = vmul.f32 %v1784_v61, %v1769_v0 }
0x2a78   :  { %v1788_v1 = vpack.c.bf16 %v1786_v62, %v1786_v62 }
0x2a7a   :  { %1790 = vrot.lane.b32.xlu1 %v1788_v1, %s2664_s13 }
0x2aec   :  { %v1791_v63 = vpop.permute.xlu1 %1790 }
0x2aed   :  { %2358 = vmatmul.mubr.msk.bf16.vlgmr.msra.gmra.mrb[16].mxu1 %vm110_vm1, %v1791_v63 }
0x2bc0   :  { %v1829_v3 = vpop.f32.mrb[16].mxu1 }
0x2bc1   :  { %v2371_v4 = vadd.f32 %v3077_v20, %v1829_v3  ;;  %v2359_v2 = vpop.f32.mrb[17].mxu1  ;;  %v3108_v20 = vsub.s32 %v1158_v16, %v1160_v17 }
0x2bc2   :  { %v1832_v5 = vpop.f32.mrb[18].mxu1 }
0x2bc3   :  { %v1836_v26 = vmul.f32 %v2371_v4, %v2803_v31  ;;  %v2360_v6 = vpop.f32.mrb[19].mxu1  ;;  %v1162_v19 = vrot.slane %v2973_v13, %v3108_v20 }
0x2bc5   :  { %v2078_v7 = vmul.f32 -1.442695, %v1836_v26  ;;  %v1170_v22 = vcombine.high %v1162_v19, %v1162_v19  ;;  %v1178_v11 = vrot.slane %v1162_v19, %v3108_v20 }
0x2bc7   :  { %2504 = vpow2.f32 %v2078_v7  ;;  %v1192_v29 = vrot.slane %v1170_v22, %v3108_v20  ;;  %v1207_v24 = vrot.slane %v1178_v11, %v3116_v30  ;;  %v1200_v15 = vcombine.high %v1178_v11, %v1178_v11 }
0x2bc9   :  { %v1211_v21 = vrot.slane %v1192_v29, %v3116_v30  ;;  %v1202_v33 = vcombine.high %v1192_v29, %v1192_v29  ;;  %v1215_v47 = vrot.slane %v1200_v15, %v3116_v30 }
0x2bcb   :  { %v1219_v35 = vrot.slane %v1202_v33, %v3116_v30 }
0x2bd1   :  { %v2505_v28 = vpop.eup %2504 }
0x2bd2   :  { %v1840_v8 = vadd.f32 1.0, %v2505_v28 }
0x2bd4   :  { %2506 = vrcp.f32 %v1840_v8 }
0x2bde   :  { %v2507_v9 = vpop.eup %2506 }
0x2bdf   :  { %v1843_v10 = vmul.f32 %v2507_v9, %v2803_v31  ;;  %v1169_v31 = vrot.slane %v1155_v60, %v3108_v20 }
0x2be1   :  { %v1844_v12 = vsub.f32 %v1843_v10, %v2807_v41  ;;  %v1171_v34 = vcombine.high %v1169_v31, %v1169_v31  ;;  %v1185_v48 = vrot.slane %v1169_v31, %v3108_v20 }
0x2be3   :  { %1847 = vrot.lane.b32.xlu0 %v1844_v12, %s2654_s7  ;;  %v1199_v13 = vrot.slane %v1171_v34, %v3108_v20  ;;  %v1845_v38 = vmul.f32 %v1844_v12, %v1780_v32  ;;  %v1223_v49 = vrot.slane %v1185_v48, %v3116_v30  ;;  %v1201_v18 = vcombine.high %v1185_v48, %v1185_v48 }
0x2be5   :  { %v1227_v36 = vrot.slane %v1199_v13, %v3116_v30  ;;  %v1203_v37 = vcombine.high %v1199_v13, %v1199_v13  ;;  %v1231_v25 = vrot.slane %v1201_v18, %v3116_v30 }
0x2be7   :  { %v1235_v55 = vrot.slane %v1203_v37, %v3116_v30 }
0x2c55   :  { %v1848_v23 = vpop.permute.xlu0 %1847 }
0x2c56   :  { %v1850_v41 = vmul.f32 %v1848_v23, %v1844_v12 }
0x2c58   :  { %1852 = vrot.lane.b32.xlu1 %v1850_v41, %s2664_s13 }
0x2c5c   :  { %1238 = vrot.lane.b32.xlu1 %v1211_v21, %s2664_s13 }
0x2c60   :  { %1242 = vrot.lane.b32.xlu1 %v1219_v35, %s2664_s13 }
0x2c64   :  { %1246 = vrot.lane.b32.xlu1 %v1227_v36, %s2664_s13 }
0x2c68   :  { %1250 = vrot.lane.b32.xlu1 %v1235_v55, %s2664_s13 }
0x2cca   :  { %v1853_v39 = vpop.permute.xlu1 %1852 }
0x2ccb   :  { %v3128_v40 = vadd.f32 %v1853_v39, %v1845_v38 }
0x2ccd   :  { %2508 = vtanh.f32 %v3128_v40 }
0x2cce   :  { %v1239_v42 = vpop.permute.xlu1 %1238 }
0x2ccf   :  { %1262 = vst.msk [vmem:[#allocation9 + $0x2] sm:$0x1] %vm1260_vm5, %v1239_v42 }
0x2cd2   :  { %v1243_v43 = vpop.permute.xlu1 %1242 }
0x2cd3   :  { %1264 = vst.msk [vmem:[#allocation9 + $0x6] sm:$0x1] %vm1260_vm5, %v1243_v43 }
0x2cd6   :  { %v1247_v44 = vpop.permute.xlu1 %1246 }
0x2cd7   :  { %v2509_v45 = vpop.eup %2508  ;;  %1266 = vst.msk [vmem:[#allocation9 + $0xa] sm:$0x1] %vm1260_vm5, %v1247_v44 }
0x2cd8   :  { %1858 = vrot.lane.b32.xlu0 %v2509_v45, %s2654_s7  ;;  %s2667_s7 = smov [#allocation10]  }
0x2cd9   :  { %s2003_s16 = sshll.u32 %s2667_s7, 4  ;;  %s2004_s16 = int_to_ptr.vmem [resolvable:$true] %s2003_s16 }
0x2cda   :  { %v1251_v46 = vpop.permute.xlu1 %1250  ;;  %s2579_s17 = scalar_lea.vmem %s2004_s16, 128  ;;  %p2584_p11 = scmp.lt.s32.totalorder %s2004_s16, %s2004_s16 }
0x2cdb   :  { %1268 = vst.msk [vmem:[#allocation9 + $0xe] sm:$0x1] %vm1260_vm5, %v1251_v46  ;;  %p2580_p10 = scmp.ne.s32.totalorder %s2004_s16, %s2579_s17  ;;  %p2585_p12 = scmp.lt.s32.totalorder %s2579_s17, %s2579_s17 }
0x2cdc   :  { %1236 = vrot.lane.b32.xlu0 %v1207_v24, %s2664_s13 }
0x2cdd   :  { %p2586_p13 = por %p2585_p12, %p2584_p11 }
0x2cdf   :  { %p2587_p0 = pnand %p2586_p13, %p2580_p10 }
0x2ce0   :  { %1240 = vrot.lane.b32.xlu0 %v1215_v47, %s2664_s13 }
0x2ce4   :  { %1244 = vrot.lane.b32.xlu0 %v1223_v49, %s2664_s13 }
0x2ce8   :  { %1248 = vrot.lane.b32.xlu0 %v1231_v25, %s2664_s13 }
0x2d4a   :  { %v1859_v50 = vpop.permute.xlu0 %1858 }
0x2d4b   :  { %v1861_v51 = vmul.f32 %v1859_v50, %v1844_v12 }
0x2d4d   :  { %v1863_v52 = vcombine.high %v1861_v51, %v1861_v51  ;;  %v1870_v53 = vrot.slane %v1861_v51, %v3108_v20  ;;  %1976 = vrot.lane.b32.xlu1 %v1861_v51, %s2664_s13 }
0x2d4e   :  { %v1237_v0 = vpop.permute.xlu0 %1236 }
0x2d4f   :  { %v1877_v54 = vrot.slane %v1863_v52, %v3108_v20  ;;  %v1878_v56 = vcombine.high %v1870_v53, %v1870_v53  ;;  %1261 = vst.msk [vmem:[#allocation9] sm:$0x1] %vm1260_vm5, %v1237_v0  ;;  %v1886_v57 = vrot.slane %v1870_v53, %v3108_v20 }
0x2d51   :  { %v1915_v58 = vrot.slane %v1886_v57, %v3116_v30  ;;  %v1900_v32 = vrot.slane %v1878_v56, %v3108_v20  ;;  %v1908_v59 = vcombine.high %v1886_v57, %v1886_v57  ;;  %v1879_v63 = vcombine.high %v1877_v54, %v1877_v54 }
0x2d52   :  { %v1241_v61 = vpop.permute.xlu0 %1240  ;;  %v1893_v4 = vrot.slane %v1877_v54, %v3108_v20 }
0x2d53   :  { %1263 = vst.msk [vmem:[#allocation9 + $0x4] sm:$0x1] %vm1260_vm5, %v1241_v61  ;;  %1944 = vrot.lane.b32.xlu0 %v1915_v58, %s2664_s13  ;;  %v1919_v62 = vrot.slane %v1900_v32, %v3116_v30  ;;  %v1910_v1 = vcombine.high %v1900_v32, %v1900_v32  ;;  %v1923_v3 = vrot.slane %v1908_v59, %v3116_v30 }
0x2d54   :  { %v1907_v26 = vrot.slane %v1879_v63, %v3108_v20  ;;  %v1931_v6 = vrot.slane %v1893_v4, %v3116_v30  ;;  %v1909_v7 = vcombine.high %v1893_v4, %v1893_v4 }
0x2d55   :  { %1946 = vrot.lane.b32.xlu1 %v1919_v62, %s2664_s13  ;;  %v1927_v5 = vrot.slane %v1910_v1, %v3116_v30 }
0x2d56   :  { %v1245_v2 = vpop.permute.xlu0 %1244  ;;  %v1935_v8 = vrot.slane %v1907_v26, %v3116_v30  ;;  %v1911_v9 = vcombine.high %v1907_v26, %v1907_v26  ;;  %v1939_v10 = vrot.slane %v1909_v7, %v3116_v30 }
0x2d57   :  { %1265 = vst.msk [vmem:[#allocation9 + $0x8] sm:$0x1] %vm1260_vm5, %v1245_v2  ;;  %1948 = vrot.lane.b32.xlu0 %v1923_v3, %s2664_s13 }
0x2d58   :  { %v1943_v12 = vrot.slane %v1911_v9, %v3116_v30 }
0x2d59   :  { %1950 = vrot.lane.b32.xlu1 %v1927_v5, %s2664_s13 }
0x2d5a   :  { %v1249_v28 = vpop.permute.xlu0 %1248 }
0x2d5b   :  { %1267 = vst.msk [vmem:[#allocation9 + $0xc] sm:$0x1] %vm1260_vm5, %v1249_v28  ;;  %1952 = vrot.lane.b32.xlu0 %v1931_v6, %s2664_s13 }
0x2d5d   :  { %1954 = vrot.lane.b32.xlu1 %v1935_v8, %s2664_s13 }
0x2d5f   :  { %1956 = vrot.lane.b32.xlu0 %v1939_v10, %s2664_s13 }
0x2d61   :  { %1958 = vrot.lane.b32.xlu1 %v1943_v12, %s2664_s13 }
0x2d63   :  { %1981 = vrot.lane.b32.xlu0 %v3128_v40, %s2666_s3 }
0x2dbf   :  { %v1977_v27 = vpop.permute.xlu1 %1976 }
0x2dc0   :  { %1979 = vst.msk [vmem:[#allocation10] sm:$0xff] %vm110_vm1, %v1977_v27 }
0x2dc1   :  { %2590 = shalt.err (!%p2587_p0)
}
0x2dc2   :  { %s2591_s20 = scalar_lea.hbm %s3234_s5, 128 }
0x2dc3   :  { %p2592_p1 = scmp.ne.s32.totalorder %s3234_s5, %s2591_s20  ;;  %p2595_p2 = scmp.lt.u32.totalorder %s2591_s20, %s3234_s5 }
0x2dc5   :  { %p2597_p3 = pnand %p2595_p2, %p2592_p1 }
0x2dc7   :  { %2600 = shalt.err (!%p2597_p3)
}
0x2dc8   :  { %2006 = dma.vmem_to_hbm [thread:$0]  %s2004_s16, 128, %s3234_s5, [#allocation11]   ;;  %v1945_v14 = vpop.permute.xlu0 %1944  ;;  %v1947_v16 = vpop.permute.xlu1 %1946 }
0x2dc9   :  { %1968 = vst.msk [vmem:[#allocation9 + $0x1] sm:$0x1] %vm1260_vm5, %v1945_v14  ;;  %1969 = vst.msk [vmem:[#allocation9 + $0x3] sm:$0x1] %vm1260_vm5, %v1947_v16  ;;  %s2668_s26 = smov [#allocation9]   ;;  %s2669_s5 = smov [#allocation12]  }
0x2dca   :  { %s1990_s27 = sshll.u32 %s2668_s26, 4  ;;  %s2013_s28 = sshll.u32 %s2669_s5, 4  ;;  %s1991_s27 = int_to_ptr.vmem [resolvable:$true] %s1990_s27  ;;  %s3195_s28 = int_to_ptr.vmem [resolvable:$true] %s2013_s28 }
0x2dcb   :  { %s2601_s29 = scalar_lea.vmem %s1991_s27, 256  ;;  %p2606_p5 = scmp.lt.s32.totalorder %s1991_s27, %s1991_s27 }
0x2dcc   :  { %v1949_v17 = vpop.permute.xlu0 %1948  ;;  %v1951_v20 = vpop.permute.xlu1 %1950  ;;  %p2602_p4 = scmp.ne.s32.totalorder %s1991_s27, %s2601_s29  ;;  %p2607_p6 = scmp.lt.s32.totalorder %s2601_s29, %s2601_s29 }
0x2dcd   :  { %1970 = vst.msk [vmem:[#allocation9 + $0x5] sm:$0x1] %vm1260_vm5, %v1949_v17  ;;  %1971 = vst.msk [vmem:[#allocation9 + $0x7] sm:$0x1] %vm1260_vm5, %v1951_v20 }
0x2dce   :  { %p2608_p7 = por %p2607_p6, %p2606_p5 }
0x2dd0   :  { %v1953_v19 = vpop.permute.xlu0 %1952  ;;  %v1955_v60 = vpop.permute.xlu1 %1954  ;;  %p2609_p8 = pnand %p2608_p7, %p2602_p4 }
0x2dd1   :  { %1972 = vst.msk [vmem:[#allocation9 + $0x9] sm:$0x1] %vm1260_vm5, %v1953_v19  ;;  %1973 = vst.msk [vmem:[#allocation9 + $0xb] sm:$0x1] %vm1260_vm5, %v1955_v60 }
0x2dd4   :  { %v1957_v22 = vpop.permute.xlu0 %1956  ;;  %v1959_v23 = vpop.permute.xlu1 %1958 }
0x2dd5   :  { %1974 = vst.msk [vmem:[#allocation9 + $0xd] sm:$0x1] %vm1260_vm5, %v1957_v22  ;;  %1975 = vst.msk [vmem:[#allocation9 + $0xf] sm:$0x1] %vm1260_vm5, %v1959_v23 }
0x2dd8   :  { %v1982_v31 = vpop.permute.xlu0 %1981 }
0x2dd9   :  { %2612 = shalt.err (!%p2609_p8)
}
0x2dda   :  { %s2613_s10 = scalar_lea.hbm %s3233_s4, 256 }
0x2ddb   :  { %p2614_p9 = scmp.ne.s32.totalorder %s3233_s4, %s2613_s10  ;;  %p2617_p10 = scmp.lt.u32.totalorder %s2613_s10, %s3233_s4 }
0x2ddd   :  { %p2619_p11 = pnand %p2617_p10, %p2614_p9 }
0x2ddf   :  { %2622 = shalt.err (!%p2619_p11)
}
0x2de0   :  { %s2670_s8 = smov 2   ;;  %1984 = vst.msk [vmem:[#allocation12] sm:$0xff] %vm110_vm1, %v1982_v31  ;;  %s2623_s3 = scalar_lea.vmem %s3195_s28, 128 }
0x2de1   :  { %1996 = dma.vmem_to_hbm [thread:$0]  %s1991_s27, 256, %s3233_s4, [#allocation5], %s2664_s13, %s2664_s13, %s2670_s8  }
0x2de2   :  { %p2624_p12 = scmp.ne.s32.totalorder %s3195_s28, %s2623_s3  ;;  %p2628_p13 = scmp.lt.s32.totalorder %s3195_s28, %s3195_s28 }
0x2de3   :  { %p2629_p0 = scmp.lt.s32.totalorder %s2623_s3, %s2623_s3 }
0x2de5   :  { %p2630_p1 = por %p2629_p0, %p2628_p13 }
0x2de7   :  { %p2631_p2 = pnand %p2630_p1, %p2624_p12 }
0x2de9   :  { %2634 = shalt.err (!%p2631_p2)
}
0x2dea   :  { %s2635_s17 = scalar_lea.hbm %s3235_s6, 128 }
0x2deb   :  { %p2636_p3 = scmp.ne.s32.totalorder %s3235_s6, %s2635_s17  ;;  %p2639_p4 = scmp.lt.u32.totalorder %s2635_s17, %s3235_s6 }
0x2ded   :  { %p2641_p5 = pnand %p2639_p4, %p2636_p3 }
0x2def   :  { %2644 = shalt.err (!%p2641_p5)
}
0x2df0   :  { %2016 = dma.vmem_to_hbm [thread:$0]  %s3195_s28, 128, %s3235_s6, [#allocation11]  }
0x2df1   :  { %2649 = dma.done.wait [#allocation5], 256  }
0x2df2   :  { %2650 = vsyncadd [#allocation5], 4294967040 }
0x2df3   :  { %2651 = dma.done.wait [#allocation11], 256  }
0x2df4   :  { %2652 = vsyncadd [#allocation11], 4294967040 }
0x2df5   :  { %2026 = vsyncpa [#allocation4], 1 }
0x2df6   :  { %2027 = vsyncpa [#allocation7], 1 }
0x2df7   :  { %2028 = vsyncpa [#allocation5], 1 }
0x2df8   :  { %2029 = vsyncpa [#allocation11], 1 }

</bundles_post_ra>
